<compile_context>
chip_gen: v7x
topology: tpu7x:2x2x1
jax: 0.10.0
libtpu: 0.0.40
codegen_flags: <defaults>
</compile_context>

<pallas_src>
import math

import jax
import jax.numpy as jnp
from jax.experimental import pallas as pl
from jax.experimental.pallas import tpu as pltpu


# --------------------------------------------------------------------------- #
# helpers
# --------------------------------------------------------------------------- #
def _vmem_limit_bytes():
    """Chip-aware VMEM budget: ~100 MiB on 128-MiB parts, ~56 MiB on v7x."""
    try:
        cap = int(pltpu.get_tpu_info().vmem_capacity_bytes)
    except Exception:
        cap = 64 * 1024 * 1024  # conservative (v7x-sized) default
    return max(32 * 1024 * 1024,
               min(cap - 8 * 1024 * 1024, 100 * 1024 * 1024))


def _const_spec(arr, single_buffer):
    """BlockSpec for an operand whose block never changes across the grid."""
    nd = arr.ndim
    idx = lambda *_: (0,) * nd
    if single_buffer:
        # index never changes -> double-buffering is pure VMEM waste
        return pl.BlockSpec(arr.shape, idx, pipeline_mode=pl.Buffered(1))
    return pl.BlockSpec(arr.shape, idx)


# --------------------------------------------------------------------------- #
# kernel 1: fused QKV projection, head-major bf16 outputs
# --------------------------------------------------------------------------- #
def _qkv_proj_kernel(nhead, dh):
    def kernel(x_ref, wq_ref, bq_ref, wk_ref, bk_ref, wv_ref, bv_ref,
               q_ref, k_ref, v_ref):
        x = x_ref[0].astype(jnp.bfloat16)                        # (TM, H)

        def project(w_ref, b_ref, o_ref):
            y = (jnp.dot(x, w_ref[...], preferred_element_type=jnp.float32)
                 + b_ref[...]).astype(jnp.bfloat16)              # (TM, H)
            # Head-major write: done once per (batch, seq-tile), i.e. amortized
            # outside the flash KV loop, so the attention kernel needs no
            # in-kernel head relayout at all.
            for h in range(nhead):
                o_ref[0, h] = y[:, h * dh:(h + 1) * dh]

        project(wq_ref, bq_ref, q_ref)
        project(wk_ref, bk_ref, k_ref)
        project(wv_ref, bv_ref, v_ref)

    return kernel


# --------------------------------------------------------------------------- #
# kernel 2: flash attention (online softmax) + residual + LayerNorm1
# --------------------------------------------------------------------------- #
def _attn_ln1_kernel(nhead, dh, scale, eps):
    def kernel(x_ref, q_ref, k_ref, v_ref, g1_ref, be1_ref, out_ref,
               m_scr, l_scr, acc_scr, ctx_scr):
        ki = pl.program_id(2)
        nk = pl.num_programs(2)

        @pl.when(ki == 0)
        def _init():
            m_scr[...] = jnp.full_like(m_scr, -jnp.inf)
            l_scr[...] = jnp.zeros_like(l_scr)
            acc_scr[...] = jnp.zeros_like(acc_scr)

        q = q_ref[0]                       # (nh, TQ, dh) bf16
        k = k_ref[0]                       # (nh, TK, dh) bf16
        v = v_ref[0]                       # (nh, TK, dh) bf16

        # Batched-head QK^T; the 1/sqrt(dh) scale is applied to the f32 scores
        # (keeps q exact in bf16).
        s = jnp.einsum("hqd,hkd->hqk", q, k,
                       preferred_element_type=jnp.float32) * scale
        m_prev = m_scr[...]                                      # (nh, TQ, 1)
        m_new = jnp.maximum(m_prev, jnp.max(s, axis=-1, keepdims=True))
        alpha = jnp.exp(m_prev - m_new)
        p = jnp.exp(s - m_new)                                   # f32 (nh,TQ,TK)
        l_scr[...] = alpha * l_scr[...] + jnp.sum(p, axis=-1, keepdims=True)
        pv = jnp.einsum("hqk,hkd->hqd", p.astype(jnp.bfloat16), v,
                        preferred_element_type=jnp.float32)
        acc_scr[...] = alpha * acc_scr[...] + pv                 # dense RMW
        m_scr[...] = m_new

        @pl.when(ki == nk - 1)
        def _finalize():
            inv_l = 1.0 / l_scr[...]          # exact reciprocal, once per q-tile
            ctx = acc_scr[...] * inv_l        # (nh, TQ, dh) f32
            # one head->hidden reassembly per q-tile (outside the KV hot loop)
            for h in range(nhead):
                ctx_scr[:, h * dh:(h + 1) * dh] = ctx[h]
            x_q = x_ref[0]                    # residual, loaded only here
            y = x_q + ctx_scr[...]            # dropout1 == identity (eval)
            mu = jnp.mean(y, axis=-1, keepdims=True)
            d = y - mu                        # two-pass LayerNorm variance
            var = jnp.mean(d * d, axis=-1, keepdims=True)
            out_ref[0] = (d * jax.lax.rsqrt(var + eps) * g1_ref[...]
                          + be1_ref[...]).astype(out_ref.dtype)

    return kernel


# --------------------------------------------------------------------------- #
# kernel 3: feed-forward + residual + LayerNorm2
# --------------------------------------------------------------------------- #
def _ffn_ln2_kernel(eps):
    def kernel(y_ref, w1_ref, b1_ref, w2_ref, b2_ref, g2_ref, be2_ref, out_ref):
        y = y_ref[0]                                             # (TM, H) f32
        h1 = jnp.dot(y.astype(jnp.bfloat16), w1_ref[...],
                     preferred_element_type=jnp.float32) + b1_ref[...]
        h1 = jnp.maximum(h1, 0.0)
        f = jnp.dot(h1.astype(jnp.bfloat16), w2_ref[...],
                    preferred_element_type=jnp.float32) + b2_ref[...]
        z = y + f                                                # dropout2 == id
        mu = jnp.mean(z, axis=-1, keepdims=True)
        d = z - mu
        var = jnp.mean(d * d, axis=-1, keepdims=True)
        out_ref[0] = (d * jax.lax.rsqrt(var + eps) * g2_ref[...]
                      + be2_ref[...]).astype(out_ref.dtype)

    return kernel


# --------------------------------------------------------------------------- #
# wrapper
# --------------------------------------------------------------------------- #
def _forward(src, params, nhead, tq, tk, tm, single_buffer_weights):
    B, S, H = src.shape
    assert H % nhead == 0, "hidden must be divisible by nhead"
    dh = H // nhead

    tq, tk, tm = min(tq, S), min(tk, S), min(tm, S)
    assert S % tq == 0 and S % tk == 0 and S % tm == 0, \
        "S must be divisible by tile sizes"

    bf16 = lambda a: a.astype(jnp.bfloat16)
    vmem = _vmem_limit_bytes()
    sb = single_buffer_weights

    # ---- 1) fused QKV projection: once per token (not once per q-tile) -----
    qkv_weights = [bf16(params["wq"]), params["bq"],
                   bf16(params["wk"]), params["bk"],
                   bf16(params["wv"]), params["bv"]]
    head_shape = jax.ShapeDtypeStruct((B, nhead, S, dh), jnp.bfloat16)
    head_out_spec = pl.BlockSpec((1, nhead, tm, dh), lambda b, si: (b, 0, si, 0))
    qh, kh, vh = pl.pallas_call(
        _qkv_proj_kernel(nhead, dh),
        out_shape=(head_shape, head_shape, head_shape),
        grid_spec=pltpu.PrefetchScalarGridSpec(
            num_scalar_prefetch=0,
            grid=(B, S // tm),
            in_specs=[pl.BlockSpec((1, tm, H), lambda b, si: (b, si, 0))]
                     + [_const_spec(a, sb) for a in qkv_weights],
            out_specs=(head_out_spec, head_out_spec, head_out_spec),
        ),
        compiler_params=pltpu.CompilerParams(
            dimension_semantics=("parallel", "parallel"),
            vmem_limit_bytes=vmem),
    )(src, *qkv_weights)

    # ---- 2) flash attention + residual + LayerNorm1 -------------------------
    ln1 = [params["g1"], params["be1"]]
    y = pl.pallas_call(
        _attn_ln1_kernel(nhead, dh, 1.0 / math.sqrt(dh), 1e-5),
        out_shape=jax.ShapeDtypeStruct((B, S, H), jnp.float32),
        grid_spec=pltpu.PrefetchScalarGridSpec(
            num_scalar_prefetch=0,
            grid=(B, S // tq, S // tk),
            in_specs=[
                pl.BlockSpec((1, tq, H), lambda b, qi, ki: (b, qi, 0)),   # residual
                pl.BlockSpec((1, nhead, tq, dh), lambda b, qi, ki: (b, 0, qi, 0)),
                pl.BlockSpec((1, nhead, tk, dh), lambda b, qi, ki: (b, 0, ki, 0)),
                pl.BlockSpec((1, nhead, tk, dh), lambda b, qi, ki: (b, 0, ki, 0)),
            ] + [_const_spec(a, sb) for a in ln1],
            out_specs=pl.BlockSpec((1, tq, H), lambda b, qi, ki: (b, qi, 0)),
            scratch_shapes=[
                pltpu.VMEM((nhead, tq, 1), jnp.float32),    # running max
                pltpu.VMEM((nhead, tq, 1), jnp.float32),    # running denom
                pltpu.VMEM((nhead, tq, dh), jnp.float32),   # attention accumulator
                pltpu.VMEM((tq, H), jnp.float32),           # head->hidden reassembly
            ]),
        compiler_params=pltpu.CompilerParams(
            dimension_semantics=("parallel", "parallel", "arbitrary"),
            vmem_limit_bytes=vmem),
    )(src, qh, kh, vh, *ln1)

    # ---- 3) FFN + residual + LayerNorm2 (own call: w1/w2 not resident above)
    ffn_args = [bf16(params["w1"]), params["bf1"],
                bf16(params["w2"]), params["bf2"],
                params["g2"], params["be2"]]
    out = pl.pallas_call(
        _ffn_ln2_kernel(1e-5),
        out_shape=jax.ShapeDtypeStruct((B, S, H), jnp.float32),
        grid_spec=pltpu.PrefetchScalarGridSpec(
            num_scalar_prefetch=0,
            grid=(B, S // tm),
            in_specs=[pl.BlockSpec((1, tm, H), lambda b, si: (b, si, 0))]
                     + [_const_spec(a, sb) for a in ffn_args],
            out_specs=pl.BlockSpec((1, tm, H), lambda b, si: (b, si, 0)),
        ),
        compiler_params=pltpu.CompilerParams(
            dimension_semantics=("parallel", "parallel"),
            vmem_limit_bytes=vmem),
    )(y, *ffn_args)

    return out


def transformer_layer(src, params, nhead=1, tq=256, tk=256, tm=256):
    """src: (B, S, H) float32.  params: dict of weights in x@W+b layout."""
    try:
        return _forward(src, params, nhead, tq, tk, tm, single_buffer_weights=True)
    except Exception:
        # Fallback for JAX versions without BlockSpec(pipeline_mode=pl.Buffered(1)).
        return _forward(src, params, nhead, tq, tk, tm, single_buffer_weights=False)


# --------------------------------------------------------------------------- #
# pure-JAX reference (mirrors the PyTorch forward, eval mode)
# --------------------------------------------------------------------------- #
def _reference(src, params, nhead=1):
    B, S, H = src.shape
    dh = H // nhead
    q = src @ params["wq"] + params["bq"]
    k = src @ params["wk"] + params["bk"]
    v = src @ params["wv"] + params["bv"]

    def split(t):  # (B,S,H) -> (B,nh,S,dh)
        return t.reshape(B, S, nhead, dh).transpose(0, 2, 1, 3)

    qh, kh, vh = split(q), split(k), split(v)
    scores = jnp.einsum("bhqd,bhkd->bhqk", qh, kh) / math.sqrt(dh)
    probs = jax.nn.softmax(scores, axis=-1)
    ctx = jnp.einsum("bhqk,bhkd->bhqd", probs, vh)
    ctx = ctx.transpose(0, 2, 1, 3).reshape(B, S, H)

    def ln(x, g, b):
        mu = jnp.mean(x, axis=-1, keepdims=True)
        var = jnp.mean((x - mu) ** 2, axis=-1, keepdims=True)
        return (x - mu) * jax.lax.rsqrt(var + 1e-5) * g + b

    y = ln(src + ctx, params["g1"], params["be1"])
    f = jnp.maximum(y @ params["w1"] + params["bf1"], 0.0) @ params["w2"] + params["bf2"]
    return ln(y + f, params["g2"], params["be2"])


# --------------------------------------------------------------------------- #
# test
# --------------------------------------------------------------------------- #
if __name__ == "__main__":
    # Small but kernel-exercising shapes: multiple q/kv/seq tiles, multi-head,
    # lane-dense hidden (H = 128), FF expansion.
    B, S, H, FF, nhead = 2, 32, 128, 256, 4
    TQ = TK = TM = 16

    key = jax.random.PRNGKey(0)
    keys = jax.random.split(key, 11)

    def lin_init(kw, kb, fan_in, fan_out):
        # weights stored as (in, out) so kernels compute x @ W + b
        # (== torch Linear with W_torch = W.T)
        bound = 1.0 / math.sqrt(fan_in)
        w = jax.random.uniform(kw, (fan_in, fan_out), jnp.float32, -bound, bound)
        b = jax.random.uniform(kb, (1, fan_out), jnp.float32, -bound, bound)
        return w, b

    wq, bq = lin_init(keys[0], keys[1], H, H)
    wk, bk = lin_init(keys[2], keys[3], H, H)
    wv, bv = lin_init(keys[4], keys[5], H, H)
    w1, bf1 = lin_init(keys[6], keys[7], H, FF)
    w2, bf2 = lin_init(keys[8], keys[9], FF, H)

    params = dict(
        wq=wq, bq=bq, wk=wk, bk=bk, wv=wv, bv=bv,
        g1=jnp.ones((1, H), jnp.float32), be1=jnp.zeros((1, H), jnp.float32),
        w1=w1, bf1=bf1, w2=w2, bf2=bf2,
        g2=jnp.ones((1, H), jnp.float32), be2=jnp.zeros((1, H), jnp.float32),
    )

    src = jax.random.normal(keys[10], (B, S, H), jnp.float32)

    out = transformer_layer(src, params, nhead=nhead, tq=TQ, tk=TK, tm=TM)
    out = jax.block_until_ready(out)

    ref = _reference(src, params, nhead=nhead)
    assert out.shape == (B, S, H)
    max_err = float(jnp.max(jnp.abs(out - ref)))
    # bf16 MXU inputs -> looser tolerance than pure f32.
    assert jnp.allclose(out, ref, atol=5e-2, rtol=5e-2), (
        f"mismatch vs JAX reference (max abs err {max_err})")

    print("KERNEL_OK")
</pallas_src>

<mosaic_0001>
module attributes {stable_mosaic.version = 11 : i64} {
  func.func @kernel(%arg0: i32, %arg1: i32, %arg2: memref<1x16x128xf32, #tpu.memory_space<vmem>>, %arg3: memref<128x128xbf16, #tpu.memory_space<vmem>>, %arg4: memref<1x128xf32, #tpu.memory_space<vmem>>, %arg5: memref<128x128xbf16, #tpu.memory_space<vmem>>, %arg6: memref<1x128xf32, #tpu.memory_space<vmem>>, %arg7: memref<128x128xbf16, #tpu.memory_space<vmem>>, %arg8: memref<1x128xf32, #tpu.memory_space<vmem>>, %arg9: memref<1x4x16x32xbf16, #tpu.memory_space<vmem>>, %arg10: memref<1x4x16x32xbf16, #tpu.memory_space<vmem>>, %arg11: memref<1x4x16x32xbf16, #tpu.memory_space<vmem>>) attributes {dimension_semantics = [#tpu.dimension_semantics<parallel>, #tpu.dimension_semantics<parallel>], iteration_bounds = array<i64: 2, 2>, scalar_prefetch = 0 : i64, scratch_operands = 0 : i64, tpu.core_type = #tpu.core_type<tc>, window_params = [{transform_indices = @transform_0, window_bounds = array<i64: 1, 16, 128>}, {pipeline_mode = #tpu.pipeline_mode<synchronous>, transform_indices = @transform_1, window_bounds = array<i64: 128, 128>}, {pipeline_mode = #tpu.pipeline_mode<synchronous>, transform_indices = @transform_2, window_bounds = array<i64: 1, 128>}, {pipeline_mode = #tpu.pipeline_mode<synchronous>, transform_indices = @transform_3, window_bounds = array<i64: 128, 128>}, {pipeline_mode = #tpu.pipeline_mode<synchronous>, transform_indices = @transform_4, window_bounds = array<i64: 1, 128>}, {pipeline_mode = #tpu.pipeline_mode<synchronous>, transform_indices = @transform_5, window_bounds = array<i64: 128, 128>}, {pipeline_mode = #tpu.pipeline_mode<synchronous>, transform_indices = @transform_6, window_bounds = array<i64: 1, 128>}, {transform_indices = @transform_7, window_bounds = array<i64: 1, 4, 16, 32>}, {transform_indices = @transform_8, window_bounds = array<i64: 1, 4, 16, 32>}, {transform_indices = @transform_9, window_bounds = array<i64: 1, 4, 16, 32>}]} {
    %c0 = arith.constant 0 : index
    %c0_0 = arith.constant 0 : index
    %c0_1 = arith.constant 0 : index
    %0 = vector.load %arg2[%c0, %c0_0, %c0_1] : memref<1x16x128xf32, #tpu.memory_space<vmem>>, vector<1x16x128xf32>
    %1 = vector.shape_cast %0 : vector<1x16x128xf32> to vector<16x128xf32>
    %2 = arith.truncf %1 : vector<16x128xf32> to vector<16x128xbf16>
    %c0_2 = arith.constant 0 : index
    %c0_3 = arith.constant 0 : index
    %3 = vector.load %arg3[%c0_2, %c0_3] : memref<128x128xbf16, #tpu.memory_space<vmem>>, vector<128x128xbf16>
    %cst = arith.constant dense<0.000000e+00> : vector<16x128xf32>
    %4 = tpu.matmul %2, %3, %cst {dimension_numbers = #tpu.dot_dimension_numbers<[1], [0], [0], [1], [0, 0, 1, 1], [], []>} : vector<16x128xbf16>, vector<128x128xbf16>, vector<16x128xf32> -> vector<16x128xf32>
    %c0_4 = arith.constant 0 : index
    %c0_5 = arith.constant 0 : index
    %5 = vector.load %arg4[%c0_4, %c0_5] : memref<1x128xf32, #tpu.memory_space<vmem>>, vector<1x128xf32>
    %6 = vector.broadcast %5 : vector<1x128xf32> to vector<16x128xf32>
    %7 = arith.addf %4, %6 : vector<16x128xf32>
    %8 = arith.truncf %7 : vector<16x128xf32> to vector<16x128xbf16>
    %9 = vector.extract_strided_slice %8 {offsets = [0, 0], sizes = [16, 32], strides = [1, 1]} : vector<16x128xbf16> to vector<16x32xbf16>
    %c0_6 = arith.constant 0 : index
    %c0_7 = arith.constant 0 : index
    %c0_8 = arith.constant 0 : index
    %c0_9 = arith.constant 0 : index
    %10 = vector.load %arg9[%c0_6, %c0_7, %c0_8, %c0_9] : memref<1x4x16x32xbf16, #tpu.memory_space<vmem>>, vector<1x1x16x32xbf16>
    %11 = vector.shape_cast %10 : vector<1x1x16x32xbf16> to vector<16x32xbf16>
    %12 = vector.shape_cast %9 : vector<16x32xbf16> to vector<1x1x16x32xbf16>
    tpu.vector_store %arg9[%c0_6, %c0_7, %c0_8, %c0_9], %12 {strides = array<i32>} : memref<1x4x16x32xbf16, #tpu.memory_space<vmem>>, vector<1x1x16x32xbf16>,
    %13 = vector.extract_strided_slice %8 {offsets = [0, 32], sizes = [16, 32], strides = [1, 1]} : vector<16x128xbf16> to vector<16x32xbf16>
    %c0_10 = arith.constant 0 : index
    %c1 = arith.constant 1 : index
    %c0_11 = arith.constant 0 : index
    %c0_12 = arith.constant 0 : index
    %14 = vector.load %arg9[%c0_10, %c1, %c0_11, %c0_12] : memref<1x4x16x32xbf16, #tpu.memory_space<vmem>>, vector<1x1x16x32xbf16>
    %15 = vector.shape_cast %14 : vector<1x1x16x32xbf16> to vector<16x32xbf16>
    %16 = vector.shape_cast %13 : vector<16x32xbf16> to vector<1x1x16x32xbf16>
    tpu.vector_store %arg9[%c0_10, %c1, %c0_11, %c0_12], %16 {strides = array<i32>} : memref<1x4x16x32xbf16, #tpu.memory_space<vmem>>, vector<1x1x16x32xbf16>,
    %17 = vector.extract_strided_slice %8 {offsets = [0, 64], sizes = [16, 32], strides = [1, 1]} : vector<16x128xbf16> to vector<16x32xbf16>
    %c0_13 = arith.constant 0 : index
    %c2 = arith.constant 2 : index
    %c0_14 = arith.constant 0 : index
    %c0_15 = arith.constant 0 : index
    %18 = vector.load %arg9[%c0_13, %c2, %c0_14, %c0_15] : memref<1x4x16x32xbf16, #tpu.memory_space<vmem>>, vector<1x1x16x32xbf16>
    %19 = vector.shape_cast %18 : vector<1x1x16x32xbf16> to vector<16x32xbf16>
    %20 = vector.shape_cast %17 : vector<16x32xbf16> to vector<1x1x16x32xbf16>
    tpu.vector_store %arg9[%c0_13, %c2, %c0_14, %c0_15], %20 {strides = array<i32>} : memref<1x4x16x32xbf16, #tpu.memory_space<vmem>>, vector<1x1x16x32xbf16>,
    %21 = vector.extract_strided_slice %8 {offsets = [0, 96], sizes = [16, 32], strides = [1, 1]} : vector<16x128xbf16> to vector<16x32xbf16>
    %c0_16 = arith.constant 0 : index
    %c3 = arith.constant 3 : index
    %c0_17 = arith.constant 0 : index
    %c0_18 = arith.constant 0 : index
    %22 = vector.load %arg9[%c0_16, %c3, %c0_17, %c0_18] : memref<1x4x16x32xbf16, #tpu.memory_space<vmem>>, vector<1x1x16x32xbf16>
    %23 = vector.shape_cast %22 : vector<1x1x16x32xbf16> to vector<16x32xbf16>
    %24 = vector.shape_cast %21 : vector<16x32xbf16> to vector<1x1x16x32xbf16>
    tpu.vector_store %arg9[%c0_16, %c3, %c0_17, %c0_18], %24 {strides = array<i32>} : memref<1x4x16x32xbf16, #tpu.memory_space<vmem>>, vector<1x1x16x32xbf16>,
    %c0_19 = arith.constant 0 : index
    %c0_20 = arith.constant 0 : index
    %25 = vector.load %arg5[%c0_19, %c0_20] : memref<128x128xbf16, #tpu.memory_space<vmem>>, vector<128x128xbf16>
    %cst_21 = arith.constant dense<0.000000e+00> : vector<16x128xf32>
    %26 = tpu.matmul %2, %25, %cst_21 {dimension_numbers = #tpu.dot_dimension_numbers<[1], [0], [0], [1], [0, 0, 1, 1], [], []>} : vector<16x128xbf16>, vector<128x128xbf16>, vector<16x128xf32> -> vector<16x128xf32>
    %c0_22 = arith.constant 0 : index
    %c0_23 = arith.constant 0 : index
    %27 = vector.load %arg6[%c0_22, %c0_23] : memref<1x128xf32, #tpu.memory_space<vmem>>, vector<1x128xf32>
    %28 = vector.broadcast %27 : vector<1x128xf32> to vector<16x128xf32>
    %29 = arith.addf %26, %28 : vector<16x128xf32>
    %30 = arith.truncf %29 : vector<16x128xf32> to vector<16x128xbf16>
    %31 = vector.extract_strided_slice %30 {offsets = [0, 0], sizes = [16, 32], strides = [1, 1]} : vector<16x128xbf16> to vector<16x32xbf16>
    %c0_24 = arith.constant 0 : index
    %c0_25 = arith.constant 0 : index
    %c0_26 = arith.constant 0 : index
    %c0_27 = arith.constant 0 : index
    %32 = vector.load %arg10[%c0_24, %c0_25, %c0_26, %c0_27] : memref<1x4x16x32xbf16, #tpu.memory_space<vmem>>, vector<1x1x16x32xbf16>
    %33 = vector.shape_cast %32 : vector<1x1x16x32xbf16> to vector<16x32xbf16>
    %34 = vector.shape_cast %31 : vector<16x32xbf16> to vector<1x1x16x32xbf16>
    tpu.vector_store %arg10[%c0_24, %c0_25, %c0_26, %c0_27], %34 {strides = array<i32>} : memref<1x4x16x32xbf16, #tpu.memory_space<vmem>>, vector<1x1x16x32xbf16>,
    %35 = vector.extract_strided_slice %30 {offsets = [0, 32], sizes = [16, 32], strides = [1, 1]} : vector<16x128xbf16> to vector<16x32xbf16>
    %c0_28 = arith.constant 0 : index
    %c1_29 = arith.constant 1 : index
    %c0_30 = arith.constant 0 : index
    %c0_31 = arith.constant 0 : index
    %36 = vector.load %arg10[%c0_28, %c1_29, %c0_30, %c0_31] : memref<1x4x16x32xbf16, #tpu.memory_space<vmem>>, vector<1x1x16x32xbf16>
    %37 = vector.shape_cast %36 : vector<1x1x16x32xbf16> to vector<16x32xbf16>
    %38 = vector.shape_cast %35 : vector<16x32xbf16> to vector<1x1x16x32xbf16>
    tpu.vector_store %arg10[%c0_28, %c1_29, %c0_30, %c0_31], %38 {strides = array<i32>} : memref<1x4x16x32xbf16, #tpu.memory_space<vmem>>, vector<1x1x16x32xbf16>,
    %39 = vector.extract_strided_slice %30 {offsets = [0, 64], sizes = [16, 32], strides = [1, 1]} : vector<16x128xbf16> to vector<16x32xbf16>
    %c0_32 = arith.constant 0 : index
    %c2_33 = arith.constant 2 : index
    %c0_34 = arith.constant 0 : index
    %c0_35 = arith.constant 0 : index
    %40 = vector.load %arg10[%c0_32, %c2_33, %c0_34, %c0_35] : memref<1x4x16x32xbf16, #tpu.memory_space<vmem>>, vector<1x1x16x32xbf16>
    %41 = vector.shape_cast %40 : vector<1x1x16x32xbf16> to vector<16x32xbf16>
    %42 = vector.shape_cast %39 : vector<16x32xbf16> to vector<1x1x16x32xbf16>
    tpu.vector_store %arg10[%c0_32, %c2_33, %c0_34, %c0_35], %42 {strides = array<i32>} : memref<1x4x16x32xbf16, #tpu.memory_space<vmem>>, vector<1x1x16x32xbf16>,
    %43 = vector.extract_strided_slice %30 {offsets = [0, 96], sizes = [16, 32], strides = [1, 1]} : vector<16x128xbf16> to vector<16x32xbf16>
    %c0_36 = arith.constant 0 : index
    %c3_37 = arith.constant 3 : index
    %c0_38 = arith.constant 0 : index
    %c0_39 = arith.constant 0 : index
    %44 = vector.load %arg10[%c0_36, %c3_37, %c0_38, %c0_39] : memref<1x4x16x32xbf16, #tpu.memory_space<vmem>>, vector<1x1x16x32xbf16>
    %45 = vector.shape_cast %44 : vector<1x1x16x32xbf16> to vector<16x32xbf16>
    %46 = vector.shape_cast %43 : vector<16x32xbf16> to vector<1x1x16x32xbf16>
    tpu.vector_store %arg10[%c0_36, %c3_37, %c0_38, %c0_39], %46 {strides = array<i32>} : memref<1x4x16x32xbf16, #tpu.memory_space<vmem>>, vector<1x1x16x32xbf16>,
    %c0_40 = arith.constant 0 : index
    %c0_41 = arith.constant 0 : index
    %47 = vector.load %arg7[%c0_40, %c0_41] : memref<128x128xbf16, #tpu.memory_space<vmem>>, vector<128x128xbf16>
    %cst_42 = arith.constant dense<0.000000e+00> : vector<16x128xf32>
    %48 = tpu.matmul %2, %47, %cst_42 {dimension_numbers = #tpu.dot_dimension_numbers<[1], [0], [0], [1], [0, 0, 1, 1], [], []>} : vector<16x128xbf16>, vector<128x128xbf16>, vector<16x128xf32> -> vector<16x128xf32>
    %c0_43 = arith.constant 0 : index
    %c0_44 = arith.constant 0 : index
    %49 = vector.load %arg8[%c0_43, %c0_44] : memref<1x128xf32, #tpu.memory_space<vmem>>, vector<1x128xf32>
    %50 = vector.broadcast %49 : vector<1x128xf32> to vector<16x128xf32>
    %51 = arith.addf %48, %50 : vector<16x128xf32>
    %52 = arith.truncf %51 : vector<16x128xf32> to vector<16x128xbf16>
    %53 = vector.extract_strided_slice %52 {offsets = [0, 0], sizes = [16, 32], strides = [1, 1]} : vector<16x128xbf16> to vector<16x32xbf16>
    %c0_45 = arith.constant 0 : index
    %c0_46 = arith.constant 0 : index
    %c0_47 = arith.constant 0 : index
    %c0_48 = arith.constant 0 : index
    %54 = vector.load %arg11[%c0_45, %c0_46, %c0_47, %c0_48] : memref<1x4x16x32xbf16, #tpu.memory_space<vmem>>, vector<1x1x16x32xbf16>
    %55 = vector.shape_cast %54 : vector<1x1x16x32xbf16> to vector<16x32xbf16>
    %56 = vector.shape_cast %53 : vector<16x32xbf16> to vector<1x1x16x32xbf16>
    tpu.vector_store %arg11[%c0_45, %c0_46, %c0_47, %c0_48], %56 {strides = array<i32>} : memref<1x4x16x32xbf16, #tpu.memory_space<vmem>>, vector<1x1x16x32xbf16>,
    %57 = vector.extract_strided_slice %52 {offsets = [0, 32], sizes = [16, 32], strides = [1, 1]} : vector<16x128xbf16> to vector<16x32xbf16>
    %c0_49 = arith.constant 0 : index
    %c1_50 = arith.constant 1 : index
    %c0_51 = arith.constant 0 : index
    %c0_52 = arith.constant 0 : index
    %58 = vector.load %arg11[%c0_49, %c1_50, %c0_51, %c0_52] : memref<1x4x16x32xbf16, #tpu.memory_space<vmem>>, vector<1x1x16x32xbf16>
    %59 = vector.shape_cast %58 : vector<1x1x16x32xbf16> to vector<16x32xbf16>
    %60 = vector.shape_cast %57 : vector<16x32xbf16> to vector<1x1x16x32xbf16>
    tpu.vector_store %arg11[%c0_49, %c1_50, %c0_51, %c0_52], %60 {strides = array<i32>} : memref<1x4x16x32xbf16, #tpu.memory_space<vmem>>, vector<1x1x16x32xbf16>,
    %61 = vector.extract_strided_slice %52 {offsets = [0, 64], sizes = [16, 32], strides = [1, 1]} : vector<16x128xbf16> to vector<16x32xbf16>
    %c0_53 = arith.constant 0 : index
    %c2_54 = arith.constant 2 : index
    %c0_55 = arith.constant 0 : index
    %c0_56 = arith.constant 0 : index
    %62 = vector.load %arg11[%c0_53, %c2_54, %c0_55, %c0_56] : memref<1x4x16x32xbf16, #tpu.memory_space<vmem>>, vector<1x1x16x32xbf16>
    %63 = vector.shape_cast %62 : vector<1x1x16x32xbf16> to vector<16x32xbf16>
    %64 = vector.shape_cast %61 : vector<16x32xbf16> to vector<1x1x16x32xbf16>
    tpu.vector_store %arg11[%c0_53, %c2_54, %c0_55, %c0_56], %64 {strides = array<i32>} : memref<1x4x16x32xbf16, #tpu.memory_space<vmem>>, vector<1x1x16x32xbf16>,
    %65 = vector.extract_strided_slice %52 {offsets = [0, 96], sizes = [16, 32], strides = [1, 1]} : vector<16x128xbf16> to vector<16x32xbf16>
    %c0_57 = arith.constant 0 : index
    %c3_58 = arith.constant 3 : index
    %c0_59 = arith.constant 0 : index
    %c0_60 = arith.constant 0 : index
    %66 = vector.load %arg11[%c0_57, %c3_58, %c0_59, %c0_60] : memref<1x4x16x32xbf16, #tpu.memory_space<vmem>>, vector<1x1x16x32xbf16>
    %67 = vector.shape_cast %66 : vector<1x1x16x32xbf16> to vector<16x32xbf16>
    %68 = vector.shape_cast %65 : vector<16x32xbf16> to vector<1x1x16x32xbf16>
    tpu.vector_store %arg11[%c0_57, %c3_58, %c0_59, %c0_60], %68 {strides = array<i32>} : memref<1x4x16x32xbf16, #tpu.memory_space<vmem>>, vector<1x1x16x32xbf16>,
    return
  }
  func.func @transform_0(%arg0: i32, %arg1: i32) -> (i32, i32, i32) {
    %c0_i32 = arith.constant 0 : i32
    %c0_i32_0 = arith.constant 0 : i32
    return %arg0, %arg1, %c0_i32 : i32, i32, i32
  }
  func.func @transform_1(%arg0: i32, %arg1: i32) -> (i32, i32) {
    %c0_i32 = arith.constant 0 : i32
    %c0_i32_0 = arith.constant 0 : i32
    %c0_i32_1 = arith.constant 0 : i32
    return %c0_i32, %c0_i32_0 : i32, i32
  }
  func.func @transform_2(%arg0: i32, %arg1: i32) -> (i32, i32) {
    %c0_i32 = arith.constant 0 : i32
    %c0_i32_0 = arith.constant 0 : i32
    %c0_i32_1 = arith.constant 0 : i32
    return %c0_i32, %c0_i32_0 : i32, i32
  }
  func.func @transform_3(%arg0: i32, %arg1: i32) -> (i32, i32) {
    %c0_i32 = arith.constant 0 : i32
    %c0_i32_0 = arith.constant 0 : i32
    %c0_i32_1 = arith.constant 0 : i32
    return %c0_i32, %c0_i32_0 : i32, i32
  }
  func.func @transform_4(%arg0: i32, %arg1: i32) -> (i32, i32) {
    %c0_i32 = arith.constant 0 : i32
    %c0_i32_0 = arith.constant 0 : i32
    %c0_i32_1 = arith.constant 0 : i32
    return %c0_i32, %c0_i32_0 : i32, i32
  }
  func.func @transform_5(%arg0: i32, %arg1: i32) -> (i32, i32) {
    %c0_i32 = arith.constant 0 : i32
    %c0_i32_0 = arith.constant 0 : i32
    %c0_i32_1 = arith.constant 0 : i32
    return %c0_i32, %c0_i32_0 : i32, i32
  }
  func.func @transform_6(%arg0: i32, %arg1: i32) -> (i32, i32) {
    %c0_i32 = arith.constant 0 : i32
    %c0_i32_0 = arith.constant 0 : i32
    %c0_i32_1 = arith.constant 0 : i32
    return %c0_i32, %c0_i32_0 : i32, i32
  }
  func.func @transform_7(%arg0: i32, %arg1: i32) -> (i32, i32, i32, i32) {
    %c0_i32 = arith.constant 0 : i32
    %c0_i32_0 = arith.constant 0 : i32
    %c0_i32_1 = arith.constant 0 : i32
    return %arg0, %c0_i32, %arg1, %c0_i32_0 : i32, i32, i32, i32
  }
  func.func @transform_8(%arg0: i32, %arg1: i32) -> (i32, i32, i32, i32) {
    %c0_i32 = arith.constant 0 : i32
    %c0_i32_0 = arith.constant 0 : i32
    %c0_i32_1 = arith.constant 0 : i32
    return %arg0, %c0_i32, %arg1, %c0_i32_0 : i32, i32, i32, i32
  }
  func.func @transform_9(%arg0: i32, %arg1: i32) -> (i32, i32, i32, i32) {
    %c0_i32 = arith.constant 0 : i32
    %c0_i32_0 = arith.constant 0 : i32
    %c0_i32_1 = arith.constant 0 : i32
    return %arg0, %c0_i32, %arg1, %c0_i32_0 : i32, i32, i32, i32
  }
}

module attributes {stable_mosaic.version = 11 : i64} {
  func.func @kernel(%arg0: i32, %arg1: i32, %arg2: memref<1x16x128xf32, #tpu.memory_space<vmem>>, %arg3: memref<128x128xbf16, #tpu.memory_space<vmem>>, %arg4: memref<1x128xf32, #tpu.memory_space<vmem>>, %arg5: memref<128x128xbf16, #tpu.memory_space<vmem>>, %arg6: memref<1x128xf32, #tpu.memory_space<vmem>>, %arg7: memref<128x128xbf16, #tpu.memory_space<vmem>>, %arg8: memref<1x128xf32, #tpu.memory_space<vmem>>, %arg9: memref<1x4x16x32xbf16, #tpu.memory_space<vmem>>, %arg10: memref<1x4x16x32xbf16, #tpu.memory_space<vmem>>, %arg11: memref<1x4x16x32xbf16, #tpu.memory_space<vmem>>) attributes {dimension_semantics = [#tpu.dimension_semantics<parallel>, #tpu.dimension_semantics<parallel>], iteration_bounds = array<i64: 2, 2>, scalar_prefetch = 0 : i64, scratch_operands = 0 : i64, tpu.core_type = #tpu.core_type<tc>, window_params = [{transform_indices = @transform_0, window_bounds = array<i64: 1, 16, 128>}, {pipeline_mode = #tpu.pipeline_mode<synchronous>, transform_indices = @transform_1, window_bounds = array<i64: 128, 128>}, {pipeline_mode = #tpu.pipeline_mode<synchronous>, transform_indices = @transform_2, window_bounds = array<i64: 1, 128>}, {pipeline_mode = #tpu.pipeline_mode<synchronous>, transform_indices = @transform_3, window_bounds = array<i64: 128, 128>}, {pipeline_mode = #tpu.pipeline_mode<synchronous>, transform_indices = @transform_4, window_bounds = array<i64: 1, 128>}, {pipeline_mode = #tpu.pipeline_mode<synchronous>, transform_indices = @transform_5, window_bounds = array<i64: 128, 128>}, {pipeline_mode = #tpu.pipeline_mode<synchronous>, transform_indices = @transform_6, window_bounds = array<i64: 1, 128>}, {transform_indices = @transform_7, window_bounds = array<i64: 1, 4, 16, 32>}, {transform_indices = @transform_8, window_bounds = array<i64: 1, 4, 16, 32>}, {transform_indices = @transform_9, window_bounds = array<i64: 1, 4, 16, 32>}]} {
    %c0 = arith.constant 0 : index
    %c0_0 = arith.constant 0 : index
    %c0_1 = arith.constant 0 : index
    %0 = vector.load %arg2[%c0, %c0_0, %c0_1] : memref<1x16x128xf32, #tpu.memory_space<vmem>>, vector<1x16x128xf32>
    %1 = vector.shape_cast %0 : vector<1x16x128xf32> to vector<16x128xf32>
    %2 = arith.truncf %1 : vector<16x128xf32> to vector<16x128xbf16>
    %c0_2 = arith.constant 0 : index
    %c0_3 = arith.constant 0 : index
    %3 = vector.load %arg3[%c0_2, %c0_3] : memref<128x128xbf16, #tpu.memory_space<vmem>>, vector<128x128xbf16>
    %cst = arith.constant dense<0.000000e+00> : vector<16x128xf32>
    %4 = tpu.matmul %2, %3, %cst {dimension_numbers = #tpu.dot_dimension_numbers<[1], [0], [0], [1], [0, 0, 1, 1], [], []>} : vector<16x128xbf16>, vector<128x128xbf16>, vector<16x128xf32> -> vector<16x128xf32>
    %c0_4 = arith.constant 0 : index
    %c0_5 = arith.constant 0 : index
    %5 = vector.load %arg4[%c0_4, %c0_5] : memref<1x128xf32, #tpu.memory_space<vmem>>, vector<1x128xf32>
    %6 = vector.broadcast %5 : vector<1x128xf32> to vector<16x128xf32>
    %7 = arith.addf %4, %6 : vector<16x128xf32>
    %8 = arith.truncf %7 : vector<16x128xf32> to vector<16x128xbf16>
    %9 = vector.extract_strided_slice %8 {offsets = [0, 0], sizes = [16, 32], strides = [1, 1]} : vector<16x128xbf16> to vector<16x32xbf16>
    %c0_6 = arith.constant 0 : index
    %c0_7 = arith.constant 0 : index
    %c0_8 = arith.constant 0 : index
    %c0_9 = arith.constant 0 : index
    %10 = vector.load %arg9[%c0_6, %c0_7, %c0_8, %c0_9] : memref<1x4x16x32xbf16, #tpu.memory_space<vmem>>, vector<1x1x16x32xbf16>
    %11 = vector.shape_cast %10 : vector<1x1x16x32xbf16> to vector<16x32xbf16>
    %12 = vector.shape_cast %9 : vector<16x32xbf16> to vector<1x1x16x32xbf16>
    tpu.vector_store %arg9[%c0_6, %c0_7, %c0_8, %c0_9], %12 {strides = array<i32>} : memref<1x4x16x32xbf16, #tpu.memory_space<vmem>>, vector<1x1x16x32xbf16>,
    %13 = vector.extract_strided_slice %8 {offsets = [0, 32], sizes = [16, 32], strides = [1, 1]} : vector<16x128xbf16> to vector<16x32xbf16>
    %c0_10 = arith.constant 0 : index
    %c1 = arith.constant 1 : index
    %c0_11 = arith.constant 0 : index
    %c0_12 = arith.constant 0 : index
    %14 = vector.load %arg9[%c0_10, %c1, %c0_11, %c0_12] : memref<1x4x16x32xbf16, #tpu.memory_space<vmem>>, vector<1x1x16x32xbf16>
    %15 = vector.shape_cast %14 : vector<1x1x16x32xbf16> to vector<16x32xbf16>
    %16 = vector.shape_cast %13 : vector<16x32xbf16> to vector<1x1x16x32xbf16>
    tpu.vector_store %arg9[%c0_10, %c1, %c0_11, %c0_12], %16 {strides = array<i32>} : memref<1x4x16x32xbf16, #tpu.memory_space<vmem>>, vector<1x1x16x32xbf16>,
    %17 = vector.extract_strided_slice %8 {offsets = [0, 64], sizes = [16, 32], strides = [1, 1]} : vector<16x128xbf16> to vector<16x32xbf16>
    %c0_13 = arith.constant 0 : index
    %c2 = arith.constant 2 : index
    %c0_14 = arith.constant 0 : index
    %c0_15 = arith.constant 0 : index
    %18 = vector.load %arg9[%c0_13, %c2, %c0_14, %c0_15] : memref<1x4x16x32xbf16, #tpu.memory_space<vmem>>, vector<1x1x16x32xbf16>
    %19 = vector.shape_cast %18 : vector<1x1x16x32xbf16> to vector<16x32xbf16>
    %20 = vector.shape_cast %17 : vector<16x32xbf16> to vector<1x1x16x32xbf16>
    tpu.vector_store %arg9[%c0_13, %c2, %c0_14, %c0_15], %20 {strides = array<i32>} : memref<1x4x16x32xbf16, #tpu.memory_space<vmem>>, vector<1x1x16x32xbf16>,
    %21 = vector.extract_strided_slice %8 {offsets = [0, 96], sizes = [16, 32], strides = [1, 1]} : vector<16x128xbf16> to vector<16x32xbf16>
    %c0_16 = arith.constant 0 : index
    %c3 = arith.constant 3 : index
    %c0_17 = arith.constant 0 : index
    %c0_18 = arith.constant 0 : index
    %22 = vector.load %arg9[%c0_16, %c3, %c0_17, %c0_18] : memref<1x4x16x32xbf16, #tpu.memory_space<vmem>>, vector<1x1x16x32xbf16>
    %23 = vector.shape_cast %22 : vector<1x1x16x32xbf16> to vector<16x32xbf16>
    %24 = vector.shape_cast %21 : vector<16x32xbf16> to vector<1x1x16x32xbf16>
    tpu.vector_store %arg9[%c0_16, %c3, %c0_17, %c0_18], %24 {strides = array<i32>} : memref<1x4x16x32xbf16, #tpu.memory_space<vmem>>, vector<1x1x16x32xbf16>,
    %c0_19 = arith.constant 0 : index
    %c0_20 = arith.constant 0 : index
    %25 = vector.load %arg5[%c0_19, %c0_20] : memref<128x128xbf16, #tpu.memory_space<vmem>>, vector<128x128xbf16>
    %cst_21 = arith.constant dense<0.000000e+00> : vector<16x128xf32>
    %26 = tpu.matmul %2, %25, %cst_21 {dimension_numbers = #tpu.dot_dimension_numbers<[1], [0], [0], [1], [0, 0, 1, 1], [], []>} : vector<16x128xbf16>, vector<128x128xbf16>, vector<16x128xf32> -> vector<16x128xf32>
    %c0_22 = arith.constant 0 : index
    %c0_23 = arith.constant 0 : index
    %27 = vector.load %arg6[%c0_22, %c0_23] : memref<1x128xf32, #tpu.memory_space<vmem>>, vector<1x128xf32>
    %28 = vector.broadcast %27 : vector<1x128xf32> to vector<16x128xf32>
    %29 = arith.addf %26, %28 : vector<16x128xf32>
    %30 = arith.truncf %29 : vector<16x128xf32> to vector<16x128xbf16>
    %31 = vector.extract_strided_slice %30 {offsets = [0, 0], sizes = [16, 32], strides = [1, 1]} : vector<16x128xbf16> to vector<16x32xbf16>
    %c0_24 = arith.constant 0 : index
    %c0_25 = arith.constant 0 : index
    %c0_26 = arith.constant 0 : index
    %c0_27 = arith.constant 0 : index
    %32 = vector.load %arg10[%c0_24, %c0_25, %c0_26, %c0_27] : memref<1x4x16x32xbf16, #tpu.memory_space<vmem>>, vector<1x1x16x32xbf16>
    %33 = vector.shape_cast %32 : vector<1x1x16x32xbf16> to vector<16x32xbf16>
    %34 = vector.shape_cast %31 : vector<16x32xbf16> to vector<1x1x16x32xbf16>
    tpu.vector_store %arg10[%c0_24, %c0_25, %c0_26, %c0_27], %34 {strides = array<i32>} : memref<1x4x16x32xbf16, #tpu.memory_space<vmem>>, vector<1x1x16x32xbf16>,
    %35 = vector.extract_strided_slice %30 {offsets = [0, 32], sizes = [16, 32], strides = [1, 1]} : vector<16x128xbf16> to vector<16x32xbf16>
    %c0_28 = arith.constant 0 : index
    %c1_29 = arith.constant 1 : index
    %c0_30 = arith.constant 0 : index
    %c0_31 = arith.constant 0 : index
    %36 = vector.load %arg10[%c0_28, %c1_29, %c0_30, %c0_31] : memref<1x4x16x32xbf16, #tpu.memory_space<vmem>>, vector<1x1x16x32xbf16>
    %37 = vector.shape_cast %36 : vector<1x1x16x32xbf16> to vector<16x32xbf16>
    %38 = vector.shape_cast %35 : vector<16x32xbf16> to vector<1x1x16x32xbf16>
    tpu.vector_store %arg10[%c0_28, %c1_29, %c0_30, %c0_31], %38 {strides = array<i32>} : memref<1x4x16x32xbf16, #tpu.memory_space<vmem>>, vector<1x1x16x32xbf16>,
    %39 = vector.extract_strided_slice %30 {offsets = [0, 64], sizes = [16, 32], strides = [1, 1]} : vector<16x128xbf16> to vector<16x32xbf16>
    %c0_32 = arith.constant 0 : index
    %c2_33 = arith.constant 2 : index
    %c0_34 = arith.constant 0 : index
    %c0_35 = arith.constant 0 : index
    %40 = vector.load %arg10[%c0_32, %c2_33, %c0_34, %c0_35] : memref<1x4x16x32xbf16, #tpu.memory_space<vmem>>, vector<1x1x16x32xbf16>
    %41 = vector.shape_cast %40 : vector<1x1x16x32xbf16> to vector<16x32xbf16>
    %42 = vector.shape_cast %39 : vector<16x32xbf16> to vector<1x1x16x32xbf16>
    tpu.vector_store %arg10[%c0_32, %c2_33, %c0_34, %c0_35], %42 {strides = array<i32>} : memref<1x4x16x32xbf16, #tpu.memory_space<vmem>>, vector<1x1x16x32xbf16>,
    %43 = vector.extract_strided_slice %30 {offsets = [0, 96], sizes = [16, 32], strides = [1, 1]} : vector<16x128xbf16> to vector<16x32xbf16>
    %c0_36 = arith.constant 0 : index
    %c3_37 = arith.constant 3 : index
    %c0_38 = arith.constant 0 : index
    %c0_39 = arith.constant 0 : index
    %44 = vector.load %arg10[%c0_36, %c3_37, %c0_38, %c0_39] : memref<1x4x16x32xbf16, #tpu.memory_space<vmem>>, vector<1x1x16x32xbf16>
    %45 = vector.shape_cast %44 : vector<1x1x16x32xbf16> to vector<16x32xbf16>
    %46 = vector.shape_cast %43 : vector<16x32xbf16> to vector<1x1x16x32xbf16>
    tpu.vector_store %arg10[%c0_36, %c3_37, %c0_38, %c0_39], %46 {strides = array<i32>} : memref<1x4x16x32xbf16, #tpu.memory_space<vmem>>, vector<1x1x16x32xbf16>,
    %c0_40 = arith.constant 0 : index
    %c0_41 = arith.constant 0 : index
    %47 = vector.load %arg7[%c0_40, %c0_41] : memref<128x128xbf16, #tpu.memory_space<vmem>>, vector<128x128xbf16>
    %cst_42 = arith.constant dense<0.000000e+00> : vector<16x128xf32>
    %48 = tpu.matmul %2, %47, %cst_42 {dimension_numbers = #tpu.dot_dimension_numbers<[1], [0], [0], [1], [0, 0, 1, 1], [], []>} : vector<16x128xbf16>, vector<128x128xbf16>, vector<16x128xf32> -> vector<16x128xf32>
    %c0_43 = arith.constant 0 : index
    %c0_44 = arith.constant 0 : index
    %49 = vector.load %arg8[%c0_43, %c0_44] : memref<1x128xf32, #tpu.memory_space<vmem>>, vector<1x128xf32>
    %50 = vector.broadcast %49 : vector<1x128xf32> to vector<16x128xf32>
    %51 = arith.addf %48, %50 : vector<16x128xf32>
    %52 = arith.truncf %51 : vector<16x128xf32> to vector<16x128xbf16>
    %53 = vector.extract_strided_slice %52 {offsets = [0, 0], sizes = [16, 32], strides = [1, 1]} : vector<16x128xbf16> to vector<16x32xbf16>
    %c0_45 = arith.constant 0 : index
    %c0_46 = arith.constant 0 : index
    %c0_47 = arith.constant 0 : index
    %c0_48 = arith.constant 0 : index
    %54 = vector.load %arg11[%c0_45, %c0_46, %c0_47, %c0_48] : memref<1x4x16x32xbf16, #tpu.memory_space<vmem>>, vector<1x1x16x32xbf16>
    %55 = vector.shape_cast %54 : vector<1x1x16x32xbf16> to vector<16x32xbf16>
    %56 = vector.shape_cast %53 : vector<16x32xbf16> to vector<1x1x16x32xbf16>
    tpu.vector_store %arg11[%c0_45, %c0_46, %c0_47, %c0_48], %56 {strides = array<i32>} : memref<1x4x16x32xbf16, #tpu.memory_space<vmem>>, vector<1x1x16x32xbf16>,
    %57 = vector.extract_strided_slice %52 {offsets = [0, 32], sizes = [16, 32], strides = [1, 1]} : vector<16x128xbf16> to vector<16x32xbf16>
    %c0_49 = arith.constant 0 : index
    %c1_50 = arith.constant 1 : index
    %c0_51 = arith.constant 0 : index
    %c0_52 = arith.constant 0 : index
    %58 = vector.load %arg11[%c0_49, %c1_50, %c0_51, %c0_52] : memref<1x4x16x32xbf16, #tpu.memory_space<vmem>>, vector<1x1x16x32xbf16>
    %59 = vector.shape_cast %58 : vector<1x1x16x32xbf16> to vector<16x32xbf16>
    %60 = vector.shape_cast %57 : vector<16x32xbf16> to vector<1x1x16x32xbf16>
    tpu.vector_store %arg11[%c0_49, %c1_50, %c0_51, %c0_52], %60 {strides = array<i32>} : memref<1x4x16x32xbf16, #tpu.memory_space<vmem>>, vector<1x1x16x32xbf16>,
    %61 = vector.extract_strided_slice %52 {offsets = [0, 64], sizes = [16, 32], strides = [1, 1]} : vector<16x128xbf16> to vector<16x32xbf16>
    %c0_53 = arith.constant 0 : index
    %c2_54 = arith.constant 2 : index
    %c0_55 = arith.constant 0 : index
    %c0_56 = arith.constant 0 : index
    %62 = vector.load %arg11[%c0_53, %c2_54, %c0_55, %c0_56] : memref<1x4x16x32xbf16, #tpu.memory_space<vmem>>, vector<1x1x16x32xbf16>
    %63 = vector.shape_cast %62 : vector<1x1x16x32xbf16> to vector<16x32xbf16>
    %64 = vector.shape_cast %61 : vector<16x32xbf16> to vector<1x1x16x32xbf16>
    tpu.vector_store %arg11[%c0_53, %c2_54, %c0_55, %c0_56], %64 {strides = array<i32>} : memref<1x4x16x32xbf16, #tpu.memory_space<vmem>>, vector<1x1x16x32xbf16>,
    %65 = vector.extract_strided_slice %52 {offsets = [0, 96], sizes = [16, 32], strides = [1, 1]} : vector<16x128xbf16> to vector<16x32xbf16>
    %c0_57 = arith.constant 0 : index
    %c3_58 = arith.constant 3 : index
    %c0_59 = arith.constant 0 : index
    %c0_60 = arith.constant 0 : index
    %66 = vector.load %arg11[%c0_57, %c3_58, %c0_59, %c0_60] : memref<1x4x16x32xbf16, #tpu.memory_space<vmem>>, vector<1x1x16x32xbf16>
    %67 = vector.shape_cast %66 : vector<1x1x16x32xbf16> to vector<16x32xbf16>
    %68 = vector.shape_cast %65 : vector<16x32xbf16> to vector<1x1x16x32xbf16>
    tpu.vector_store %arg11[%c0_57, %c3_58, %c0_59, %c0_60], %68 {strides = array<i32>} : memref<1x4x16x32xbf16, #tpu.memory_space<vmem>>, vector<1x1x16x32xbf16>,
    return
  }
  func.func @transform_0(%arg0: i32, %arg1: i32) -> (i32, i32, i32) {
    %c0_i32 = arith.constant 0 : i32
    %c0_i32_0 = arith.constant 0 : i32
    return %arg0, %arg1, %c0_i32 : i32, i32, i32
  }
  func.func @transform_1(%arg0: i32, %arg1: i32) -> (i32, i32) {
    %c0_i32 = arith.constant 0 : i32
    %c0_i32_0 = arith.constant 0 : i32
    %c0_i32_1 = arith.constant 0 : i32
    return %c0_i32, %c0_i32_0 : i32, i32
  }
  func.func @transform_2(%arg0: i32, %arg1: i32) -> (i32, i32) {
    %c0_i32 = arith.constant 0 : i32
    %c0_i32_0 = arith.constant 0 : i32
    %c0_i32_1 = arith.constant 0 : i32
    return %c0_i32, %c0_i32_0 : i32, i32
  }
  func.func @transform_3(%arg0: i32, %arg1: i32) -> (i32, i32) {
    %c0_i32 = arith.constant 0 : i32
    %c0_i32_0 = arith.constant 0 : i32
    %c0_i32_1 = arith.constant 0 : i32
    return %c0_i32, %c0_i32_0 : i32, i32
  }
  func.func @transform_4(%arg0: i32, %arg1: i32) -> (i32, i32) {
    %c0_i32 = arith.constant 0 : i32
    %c0_i32_0 = arith.constant 0 : i32
    %c0_i32_1 = arith.constant 0 : i32
    return %c0_i32, %c0_i32_0 : i32, i32
  }
  func.func @transform_5(%arg0: i32, %arg1: i32) -> (i32, i32) {
    %c0_i32 = arith.constant 0 : i32
    %c0_i32_0 = arith.constant 0 : i32
    %c0_i32_1 = arith.constant 0 : i32
    return %c0_i32, %c0_i32_0 : i32, i32
  }
  func.func @transform_6(%arg0: i32, %arg1: i32) -> (i32, i32) {
    %c0_i32 = arith.constant 0 : i32
    %c0_i32_0 = arith.constant 0 : i32
    %c0_i32_1 = arith.constant 0 : i32
    return %c0_i32, %c0_i32_0 : i32, i32
  }
  func.func @transform_7(%arg0: i32, %arg1: i32) -> (i32, i32, i32, i32) {
    %c0_i32 = arith.constant 0 : i32
    %c0_i32_0 = arith.constant 0 : i32
    %c0_i32_1 = arith.constant 0 : i32
    return %arg0, %c0_i32, %arg1, %c0_i32_0 : i32, i32, i32, i32
  }
  func.func @transform_8(%arg0: i32, %arg1: i32) -> (i32, i32, i32, i32) {
    %c0_i32 = arith.constant 0 : i32
    %c0_i32_0 = arith.constant 0 : i32
    %c0_i32_1 = arith.constant 0 : i32
    return %arg0, %c0_i32, %arg1, %c0_i32_0 : i32, i32, i32, i32
  }
  func.func @transform_9(%arg0: i32, %arg1: i32) -> (i32, i32, i32, i32) {
    %c0_i32 = arith.constant 0 : i32
    %c0_i32_0 = arith.constant 0 : i32
    %c0_i32_1 = arith.constant 0 : i32
    return %arg0, %c0_i32, %arg1, %c0_i32_0 : i32, i32, i32, i32
  }
}

</mosaic_0001>

<bundles_post_ra>
// kernel: tpu_custom_call.1
= control target key start
LH: loop header
LB: loop body
LE: loop exit
PB: predicated region body
PF: predicated region fallthrough
CT: control target
= control target key end

     0   :  { %s2344_s0 = inlined_call_operand.hbm [shape: f32[2,32,128], index: 0, kind: input, shape index: {}]   ;;  %s2345_s1 = inlined_call_operand.hbm [shape: bf16[128,128], index: 1, kind: input, shape index: {}]   ;;  %s2346_s2 = inlined_call_operand.vmem [shape: f32[1,128], index: 2, kind: input, shape index: {}]   ;;  %s2347_s3 = inlined_call_operand.hbm [shape: bf16[128,128], index: 3, kind: input, shape index: {}]   ;;  %s2348_s4 = inlined_call_operand.vmem [shape: f32[1,128], index: 4, kind: input, shape index: {}]   ;;  %s2349_s5 = inlined_call_operand.hbm [shape: bf16[128,128], index: 5, kind: input, shape index: {}]   ;;  %s2350_s6 = inlined_call_operand.vmem [shape: f32[1,128], index: 6, kind: input, shape index: {}]   ;;  %s2351_s7 = inlined_call_operand.hbm [shape: bf16[2,4,32,32], index: 7, kind: output, shape index: {0}]   ;;  %s2352_s8 = inlined_call_operand.hbm [shape: bf16[2,4,32,32], index: 8, kind: output, shape index: {1}]   ;;  %s2353_s9 = inlined_call_operand.hbm [shape: bf16[2,4,32,32], index: 9, kind: output, shape index: {2}]  }
   0x1   :  { %2361 = sst [smem:[#allocation30_spill]] %s2345_s1 }
   0x2   :  { %2362 = sst [smem:[#allocation31_spill]] %s2347_s3 }
   0x3   :  { %2363 = sst [smem:[#allocation32_spill]] %s2349_s5 }
   0x4   :  { %2364 = sst [smem:[#allocation33_spill]] %s2351_s7 }
   0x5   :  { %2365 = sst [smem:[#allocation34_spill]] %s2352_s8 }
   0x6   :  { %2366 = sst [smem:[#allocation35_spill]] %s2353_s9 }
   0x7   :  { %15 = vsyncpa [#allocation3], 0 }
   0x8   :  { %17 = vsyncpa [#allocation3 + $0x1], 0 }
   0x9   :  { %18 = vsyncpa [#allocation6], 0 }
   0xa   :  { %19 = vsyncpa [#allocation9], 0 }
   0xb   :  { %20 = vsyncpa [#allocation4], 0 }
   0xc   :  { %22 = vsyncpa [#allocation4 + $0x1], 0 }
   0xd   :  { %23 = vsyncpa [#allocation12], 0 }
   0xe   :  { %25 = vsyncpa [#allocation12 + $0x1], 0  ;;  %s1876_s30 = smov 0   ;;  %s1878_s10 = smov 0  }
   0xf   :  { %s1880_s11 = smov 0   ;;  %s1882_s12 = smov 0  }
  0x10   :  { %s1884_s13 = smov 0   ;;  %s1886_s14 = smov 0  }
  0x11   :  { %s1888_s15 = smov 0   ;;  %s1890_s16 = smov 0  }
  0x12 LB: > { %2367 = sst [smem:[#allocation25_spill]] %s1762_s30  ;;  %s1917_s17 = sadd.s32 4294967295, %s1790_s16   ;;  %s1790_s16 = sphi %s1890_s16, %s31_s16   ;;  %s1786_s15 = sphi %s1888_s15, %s2406_s15   ;;  %s1782_s14 = sphi %s1886_s14, %s2405_s14   ;;  %s1778_s13 = sphi %s1884_s13, %s2404_s13   ;;  %s1774_s12 = sphi %s1882_s12, %s2403_s12   ;;  %s1770_s11 = sphi %s1880_s11, %s2402_s11   ;;  %s1766_s10 = sphi %s1878_s10, %s2401_s10   ;;  %s1762_s30 = sphi %s1876_s30, %s2400_s30  }
  0x13   : > { %2368 = sst [smem:[#allocation26_spill]] %s1774_s12  ;;  %s2354_s18 = sadd.s32 4294967294, %s1790_s16  }
  0x14   : > { %2369 = sst [smem:[#allocation27_spill]] %s1778_s13  ;;  %p65_p0 = scmp.ne.s32.totalorder %s1766_s10, %s1762_s30 }
  0x15   : > { %p2357_p1 = scmp.eq.s32.totalorder %s1917_s17, 0  ;;  %p223_p3 = scmp.eq.s32.totalorder %s2354_s18, 3 }
  0x16   : > { %p1228_p5 = scmp.ge.s32.totalorder %s1790_s16, 1  ;;  %p286_p7 = scmp.lt.s32.totalorder %s1790_s16, 5 }
  0x17   : > { %p1928_p4 = por %p2357_p1, %p65_p0  ;;  %p1933_p6 = por %p223_p3, %p65_p0 }
  0x18   : > { %p1938_p8 = pnand %p1228_p5, %p286_p7  ;;  %s1792_s22 = smov [#allocation5]  }
  0x19   : > { %s2370_s19 = scalar_select %p1928_p4, 1, 0 }
  0x1a   : > { %s2371_s20 = scalar_select %p1933_p6, 1, 0 }
  0x1b   : > { %s2373_s21 = scalar_select %p1938_p8, 1, 0 }
  0x1c   : > { %2372 = sst [smem:[#allocation28_spill]] %s2371_s20  ;;  %s298_s23 = sshll.u32 %s1792_s22, 4  ;;  %s1942_s23 = int_to_ptr.vmem [resolvable:$true] %s298_s23 }
  0x1d   : > { %p1441_p9 = pneg %p1938_p8  ;;  %s1793_s25 = smov [#allocation7]  }
  0x1e   : > { %s314_s26 = sshll.u32 %s1793_s25, 4  ;;  %s1794_s27 = smov [#allocation8]   ;;  %s1952_s26 = int_to_ptr.vmem [resolvable:$true] %s314_s26 }
  0x1f   : > { %p1948_p10 = pnand %p1441_p9, %p2357_p1  ;;  %s1954_s28 = sshll.u32 %s1794_s27, 4  ;;  %s331_s28 = int_to_ptr.vmem [resolvable:$true] %s1954_s28 }
  0x20   : > { %s2375_s1 = sld [smem:[#allocation30_spill]] }
  0x21   : > { %p1964_p12 = pneg %p1948_p10 }
  0x26   : > { %s1594_s22 = scalar_lea.hbm %s2375_s1, 1024 }
  0x27   : > { %p1595_p11 = scmp.ne.s32.totalorder %s2375_s1, %s1594_s22  ;;  %p1601_p3 = scmp.lt.u32.totalorder %s1594_s22, %s2375_s1 }
  0x29   : > { %p1597_p13 = pnand %p1964_p12, %p1595_p11 }
  0x2b   : > { %p1598_p0 = pneg %p1597_p13 }
  0x2d   : > { %p1603_p5 = pnand %p1601_p3, %p1598_p0 }
  0x2f   : > { %1606 = shalt.err (!%p1603_p5)
}
  0x30   : > { %s1607_s30 = scalar_lea.vmem %s1942_s23, 1024  ;;  %p1615_p2 = scmp.lt.s32.totalorder %s1942_s23, %s1942_s23 }
  0x31   : > { %p1608_p7 = scmp.ne.s32.totalorder %s1942_s23, %s1607_s30  ;;  %p1616_p6 = scmp.lt.s32.totalorder %s1607_s30, %s1607_s30 }
  0x33   : > { %p1610_p9 = pnand %p1608_p7, %p1964_p12  ;;  %p1617_p11 = por %p1616_p6, %p1615_p2 }
  0x35   : > { %p1611_p1 = pneg %p1610_p9 }
  0x37   : > { %p1618_p13 = pnand %p1617_p11, %p1611_p1 }
  0x39   : > { %1621 = shalt.err (!%p1618_p13)
}
  0x3a   : > { %s1795_s18 = smov 64   ;;  %s1796_s20 = smov 4  }
  0x3b   : > { %1444 = dma.hbm_to_vmem [thread:$0]  (!%p1948_p10), %s2375_s1, 1024, %s1942_s23, [#allocation6], %s1795_s18, %s1795_s18, %s1796_s20  }
  0x3c   : > { %s2377_s3 = sld [smem:[#allocation31_spill]] }
  0x42   : > { %s1622_s30 = scalar_lea.hbm %s2377_s3, 1024 }
  0x43   : > { %p1623_p1 = scmp.ne.s32.totalorder %s2377_s3, %s1622_s30  ;;  %p1629_p0 = scmp.lt.u32.totalorder %s1622_s30, %s2377_s3 }
  0x45   : > { %p1625_p2 = pnand %p1623_p1, %p1964_p12 }
  0x47   : > { %p1626_p6 = pneg %p1625_p2 }
  0x49   : > { %p1631_p3 = pnand %p1629_p0, %p1626_p6 }
  0x4b   : > { %1634 = shalt.err (!%p1631_p3)
}
  0x4c   : > { %s1635_s23 = scalar_lea.vmem %s1952_s26, 1024  ;;  %p1643_p11 = scmp.lt.s32.totalorder %s1952_s26, %s1952_s26 }
  0x4d   : > { %p1636_p5 = scmp.ne.s32.totalorder %s1952_s26, %s1635_s23  ;;  %p1644_p13 = scmp.lt.s32.totalorder %s1635_s23, %s1635_s23 }
  0x4f   : > { %p1638_p7 = pnand %p1636_p5, %p1964_p12  ;;  %p1645_p1 = por %p1644_p13, %p1643_p11 }
  0x51   : > { %p1639_p9 = pneg %p1638_p7 }
  0x53   : > { %p1646_p2 = pnand %p1645_p1, %p1639_p9 }
  0x55   : > { %1649 = shalt.err (!%p1646_p2)
}
  0x56   : > { %1447 = dma.hbm_to_vmem [thread:$0]  (!%p1948_p10), %s2377_s3, 1024, %s1952_s26, [#allocation6], %s1795_s18, %s1795_s18, %s1796_s20  }
  0x57   : > { %s2378_s5 = sld [smem:[#allocation32_spill]] }
  0x5d   : > { %s1650_s29 = scalar_lea.hbm %s2378_s5, 1024 }
  0x5e   : > { %p1651_p6 = scmp.ne.s32.totalorder %s2378_s5, %s1650_s29  ;;  %p1657_p5 = scmp.lt.u32.totalorder %s1650_s29, %s2378_s5 }
  0x60   : > { %p1653_p0 = pnand %p1651_p6, %p1964_p12 }
  0x62   : > { %p1654_p3 = pneg %p1653_p0 }
  0x64   : > { %p1659_p7 = pnand %p1657_p5, %p1654_p3 }
  0x66   : > { %1662 = shalt.err (!%p1659_p7)
}
  0x67   : > { %s1663_s23 = scalar_lea.vmem %s331_s28, 1024  ;;  %p1671_p1 = scmp.lt.s32.totalorder %s331_s28, %s331_s28 }
  0x68   : > { %p1664_p9 = scmp.ne.s32.totalorder %s331_s28, %s1663_s23  ;;  %p1672_p2 = scmp.lt.s32.totalorder %s1663_s23, %s1663_s23 }
  0x6a   : > { %p1666_p11 = pnand %p1664_p9, %p1964_p12  ;;  %p1673_p4 = por %p1672_p2, %p1671_p1 }
  0x6c   : > { %p1667_p13 = pneg %p1666_p11 }
  0x6e   : > { %p1674_p8 = pnand %p1673_p4, %p1667_p13 }
  0x70   : > { %1677 = shalt.err (!%p1674_p8)
}
  0x71   : > { %1450 = dma.hbm_to_vmem [thread:$0]  (!%p1948_p10), %s2378_s5, 1024, %s331_s28, [#allocation9], %s1795_s18, %s1795_s18, %s1796_s20  }
  0x72   : > { %s40_s9 = sadd.s32 1, %s1782_s14  ;;  %s43_s24 = sadd.s32 1, %s1786_s15 }
  0x73   : > { %p41_p4 = scmp.ge.s32.totalorder %s40_s9, 2  ;;  %s52_s8 = sadd.s32 1, %s1770_s11 }
  0x74   : > { %p59_p8 = scmp.ne.s32.totalorder %s1770_s11, %s1766_s10  ;;  %p60_p12 = scmp.eq.s32.totalorder %s1790_s16, 0 }
  0x75   : > { %s2408_s9 = smov (%p41_p4, %s40_s9), 0  ;;  %s2410_s24 = smov (!%p41_p4, %s43_s24), %s1786_s15 }
  0x76   : > { %s48_s12 = ssub.s32 %s1782_s14, %s2408_s9  ;;  %p45_p6 = scmp.ge.s32.totalorder %s2410_s24, 2 }
  0x77   : > { %p2379_p0 = scmp.eq.s32.totalorder %s1917_s17, 3  ;;  %p2053_p10 = por %p60_p12, %p59_p8 }
  0x78   : > { %p1468_p5 = scmp.lt.s32.totalorder %s1790_s16, 4  ;;  %s2412_s24 = smov (%p45_p6, %s2410_s24), 0 }
  0x79   : > { %p2049_p3 = por %p2379_p0, %p59_p8  ;;  %2382 = sst [smem:[#allocation29_spill]] %s2412_s24 }
  0x7a   : > { %s347_s18 = sand.u32 1, %s1770_s11   ;;  %s1234_s20 = sshll.u32 %s1782_s14, 1 }
  0x7b   : > { %s47_s29 = ssub.s32 %s1786_s15, %s2412_s24  ;;  %s1233_s25 = sshll.u32 %s347_s18, 4 }
  0x7c   : > { %s49_s22 = sor.u32 %s48_s12, %s47_s29  ;;  %s1235_s27 = sshll.u32 %s1786_s15, 2 }
  0x7d   : > { %p50_p7 = scmp.eq.s32.totalorder %s49_s22, 0  ;;  %s351_s30 = scalar_lea.vmem [#allocation2], %s1233_s25 }
  0x7e   : > { %s360_s23 = sshll.u32 %s351_s30, 4  ;;  %s357_s7 = sadd.s32 %s1235_s27, %s1234_s20  ;;  %s2068_s23 = int_to_ptr.vmem [resolvable:$true] %s360_s23 }
  0x7f   : > { %s2066_s26 = scalar_select %p50_p7, %s1770_s11, %s52_s8  }
  0x80   : > { %s1236_s1 = sshll.u32 %s357_s7, 7  ;;  %p2074_p9 = pnand %p1468_p5, %p2053_p10 }
  0x81   : > { %s2081_s12 = scalar_lea.hbm %s2344_s0, %s1236_s1  ;;  %s2083_s8 = scalar_lea.sflag [#allocation3], %s347_s18 }
  0x82   : > { %s1678_s20 = scalar_lea.hbm %s2081_s12, 256  ;;  %p1680_p13 = pneg %p2074_p9 }
  0x83   : > { %p1679_p11 = scmp.ne.s32.totalorder %s2081_s12, %s1678_s20  ;;  %s1683_s24 = scalar_lea.hbm %s2344_s0, 1024 }
  0x84   : > { %p1684_p4 = scmp.lt.u32.totalorder %s2081_s12, %s2344_s0  ;;  %p1685_p8 = scmp.lt.u32.totalorder %s1683_s24, %s1678_s20 }
  0x85   : > { %p1681_p1 = pnand %p1680_p13, %p1679_p11  ;;  %p1687_p6 = scmp.lt.u32.totalorder %s1678_s20, %s2081_s12 }
  0x86   : > { %p1686_p12 = por %p1685_p8, %p1684_p4 }
  0x87   : > { %p1682_p2 = pneg %p1681_p1 }
  0x88   : > { %p1688_p0 = por %p1687_p6, %p1686_p12 }
  0x8a   : > { %p1689_p10 = pnand %p1688_p0, %p1682_p2 }
  0x8c   : > { %1692 = shalt.err (!%p1689_p10)
}
  0x8d   : > { %s1693_s18 = scalar_lea.vmem %s2068_s23, 256  ;;  %s1797_s22 = smov [#allocation2]  }
  0x8e   : > { %p1694_p5 = scmp.ne.s32.totalorder %s2068_s23, %s1693_s18  ;;  %s1698_s25 = sshll.u32 %s1797_s22, 4  ;;  %s1699_s25 = int_to_ptr.vmem [resolvable:$false] %s1698_s25 }
  0x8f   : > { %s1700_s27 = scalar_lea.vmem %s1699_s25, 512  ;;  %p1701_p1 = scmp.lt.s32.totalorder %s2068_s23, %s1699_s25 }
  0x90   : > { %p1696_p7 = pnand %p1694_p5, %p1680_p13  ;;  %p1702_p4 = scmp.lt.s32.totalorder %s1700_s27, %s1693_s18 }
  0x92   : > { %p1697_p11 = pneg %p1696_p7  ;;  %p1703_p8 = por %p1702_p4, %p1701_p1 }
  0x94   : > { %p1704_p12 = pnand %p1703_p8, %p1697_p11 }
  0x96   : > { %1707 = shalt.err (!%p1704_p12)
}
  0x97   : > { %s1798_s30 = smov 128   ;;  %s1799_s7 = smov 8  }
  0x98   : > { %1454 = dma.hbm_to_vmem [thread:$0]  (!%p2074_p9), %s2081_s12, 256, %s2068_s23, %s2083_s8, %s1798_s30, %s1798_s30, %s1799_s7  }
  0x99   : > { %p2384_p13 = scmp.ne.s32.totalorder %s2373_s21, 0 }
  0x9a   : > { %s2114_s20 = sand.u32 (!%p2384_p13), 1, %s1766_s10   ;;  %p2385_p2 = scmp.ne.s32.totalorder (!%p2384_p13), %s2370_s19, 0 }
  0x9b   : > { %372 = sbr.rel (%p2384_p13) target bundleno = 609 (0x261), region = 48  ;;  %s1238_s28 = sshll.u32 (!%p2384_p13), %s2114_s20, 4 }
  0x9c   : > { %s375_s5 = scalar_lea.sflag (!%p2384_p13), [#allocation3], %s2114_s20  ;;  %s2118_s24 = scalar_lea.vmem (!%p2384_p13), [#allocation2], %s1238_s28 }
  0xa2   : > { %1741 = dma.done.wait (%p2385_p2), %s375_s5, 256  }
  0xa3   : > { %1743 = vsyncadd (%p2385_p2), %s375_s5, 4294967040  ;;  %p2386_p9 = scmp.eq.s32.totalorder %s1917_s17, 0 }
  0xa5   : > { %1745 = dma.done.wait (%p2386_p9), [#allocation6], 2048   ;;  %p2387_p6 = pmov %p2386_p9 }
  0xa7   : > { %1747 = vsyncadd (%p2387_p6), [#allocation6], 4294965248  ;;  %p2388_p0 = pmov %p2387_p6 }
  0xa9   : > { %1749 = dma.done.wait (%p2388_p0), [#allocation9], 1024   ;;  %p2389_p10 = pmov %p2388_p0 }
  0xaa   : > { %v1800_v0 = vmov 0.0   ;;  %vm1801_vm0 = vmmov 0   ;;  %v1570_v1 = vld [vmem:[#allocation5] sm:$0xff]   ;;  %v1571_v2 = vld [vmem:[#allocation5 + $0x8] sm:$0xff]   ;;  %v1572_v5 = vld [vmem:[#allocation5 + $0x10] sm:$0xff]   ;;  %s2165_s3 = sshll.u32 %s2114_s20, 5 }
  0xab   : > { %1751 = vsyncadd (%p2389_p10), [#allocation9], 4294966272  ;;  %1343 = vmatprep.subr.bf16.mxu0 %v1800_v0  ;;  %1363 = vmatprep.subr.bf16.mxu1 %v1800_v0  ;;  %v1573_v3 = vld [vmem:[#allocation7] sm:$0xff]   ;;  %v1575_v4 = vld [vmem:[#allocation7 + $0x8] sm:$0xff]   ;;  %vm563_vm1 = vcmask 257024   ;;  %s2174_s8 = scalar_lea.vmem [#allocation10], %s2165_s3 }
  0xac   : > { %1359 = vmatprep.mubr.msk.bf16.mxu0 %vm1801_vm0, %v1800_v0  ;;  %1379 = vmatprep.mubr.msk.bf16.mxu1 %vm1801_vm0, %v1800_v0  ;;  %v1577_v6 = vld [vmem:[#allocation7 + $0x10] sm:$0xff]   ;;  %v1574_v7 = vld [vmem:[#allocation5 + $0x18] sm:$0xff]   ;;  %v1576_v9 = vld [vmem:[#allocation5 + $0x20] sm:$0xff]   ;;  %s1802_s1 = smov 64   ;;  %s1803_s29 = smov 96  }
  0xad   : > { %1344 = vmatpush3.bf16.msra.mxu0 %v1570_v1  ;;  %1364 = vmatpush3.bf16.msra.mxu1 %v1573_v3  ;;  %v1579_v8 = vld [vmem:[#allocation7 + $0x18] sm:$0xff]   ;;  %v1581_v10 = vld [vmem:[#allocation7 + $0x20] sm:$0xff]   ;;  %v1578_v11 = vld [vmem:[#allocation5 + $0x28] sm:$0xff]   ;;  %s2183_s18 = scalar_lea.vmem [#allocation11], %s2165_s3  ;;  %s1804_s22 = smov 32  }
  0xae   : > { %1345 = vmatprep.subr.bf16.mxu0 %v1800_v0  ;;  %1365 = vmatprep.subr.bf16.mxu1 %v1800_v0  ;;  %v1583_v12 = vld [vmem:[#allocation7 + $0x28] sm:$0xff]   ;;  %v1580_v13 = vld [vmem:[#allocation5 + $0x30] sm:$0xff]   ;;  %v1582_v15 = vld [vmem:[#allocation5 + $0x38] sm:$0xff]   ;;  %s896_s30 = sand.u32 1, %s1917_s17   ;;  %s2200_s7 = scalar_lea.vmem [#allocation13], %s2165_s3 }
  0xaf   : > { %v1584_v14 = vld [vmem:[#allocation7 + $0x30] sm:$0xff]   ;;  %v441_v17 = vld [vmem:[%s2118_s24 + $0x8] sm:$0xff]  ;;  %v1585_v20 = vld [vmem:[#allocation8] sm:$0xff]   ;;  %s892_s28 = scalar_lea.sflag [#allocation4], %s2114_s20  ;;  %s2249_s5 = scalar_lea.sflag [#allocation12], %s896_s30 }
  0xb0   : > { %v440_v16 = vld [vmem:[%s2118_s24] sm:$0xff]  ;;  %v1586_v19 = vld [vmem:[#allocation7 + $0x38] sm:$0xff]   ;;  %v1587_v21 = vld [vmem:[#allocation8 + $0x8] sm:$0xff]  }
  0xb1   : > { %1346 = vmatpush3.bf16.msra.mxu0 %v1571_v2  ;;  %1366 = vmatpush3.bf16.msra.mxu1 %v1575_v4  ;;  %v442_v18 = vpack.c.bf16 %v441_v17, %v440_v16  ;;  %v1588_v22 = vld [vmem:[#allocation8 + $0x10] sm:$0xff]   ;;  %v1589_v23 = vld [vmem:[#allocation8 + $0x18] sm:$0xff]   ;;  %v1590_v24 = vld [vmem:[#allocation8 + $0x20] sm:$0xff]  }
  0xb2   : > { %1347 = vmatprep.subr.bf16.mxu0 %v1800_v0  ;;  %1367 = vmatprep.subr.bf16.mxu1 %v1800_v0  ;;  %v1591_v25 = vld [vmem:[#allocation8 + $0x28] sm:$0xff]   ;;  %v1592_v26 = vld [vmem:[#allocation8 + $0x30] sm:$0xff]   ;;  %v1593_v27 = vld [vmem:[#allocation8 + $0x38] sm:$0xff]  }
  0xb3   : > { %v1245_v28 = vld [vmem:[%s2346_s2] ss:$0 sm:$0xff] }
  0xb4   : > { %v1262_v32 = vld [vmem:[%s2348_s4] ss:$0 sm:$0xff] }
  0xb5   : > { %1348 = vmatpush3.bf16.msra.mxu0 %v1572_v5  ;;  %1368 = vmatpush3.bf16.msra.mxu1 %v1577_v6  ;;  %v1279_v46 = vld [vmem:[%s2350_s6] ss:$0 sm:$0xff] }
  0xb6   : > { %1349 = vmatprep.subr.bf16.mxu0 %v1800_v0  ;;  %1369 = vmatprep.subr.bf16.mxu1 %v1800_v0 }
  0xb9   : > { %1350 = vmatpush3.bf16.msra.mxu0 %v1574_v7  ;;  %1370 = vmatpush3.bf16.msra.mxu1 %v1579_v8 }
  0xba   : > { %1351 = vmatprep.subr.bf16.mxu0 %v1800_v0  ;;  %1371 = vmatprep.subr.bf16.mxu1 %v1800_v0 }
  0xbd   : > { %1352 = vmatpush3.bf16.msra.mxu0 %v1576_v9  ;;  %1372 = vmatpush3.bf16.msra.mxu1 %v1581_v10 }
  0xbe   : > { %1353 = vmatprep.subr.bf16.mxu0 %v1800_v0  ;;  %1373 = vmatprep.subr.bf16.mxu1 %v1800_v0 }
  0xc1   : > { %1354 = vmatpush3.bf16.msra.mxu0 %v1578_v11  ;;  %1374 = vmatpush3.bf16.msra.mxu1 %v1583_v12 }
  0xc2   : > { %1355 = vmatprep.subr.bf16.mxu0 %v1800_v0  ;;  %1375 = vmatprep.subr.bf16.mxu1 %v1800_v0 }
  0xc5   : > { %1356 = vmatpush3.bf16.msra.mxu0 %v1580_v13  ;;  %1376 = vmatpush3.bf16.msra.mxu1 %v1584_v14 }
  0xc6   : > { %1357 = vmatprep.subr.bf16.mxu0 %v1800_v0  ;;  %1377 = vmatprep.subr.bf16.mxu1 %v1800_v0 }
  0xc9   : > { %1358 = vmatpush3.bf16.msra.mxu0 %v1582_v15  ;;  %1378 = vmatpush3.bf16.msra.mxu1 %v1586_v19 }
  0xca   : > { %1383 = vmatprep.subr.bf16.mxu0 %v1800_v0 }
  0xcc   : > { %1360 = vmatmul.mubr.bf16.vlgmr.msra.gmra.mrb[0].mxu0 %v442_v18  ;;  %1380 = vmatmul.mubr.bf16.vlgmr.msra.gmra.mrb[0].mxu1 %v442_v18 }
  0xcd   : > { %1384 = vmatpush3.bf16.msra.mxu0 %v1585_v20  ;;  %1399 = vmatprep.mubr.msk.bf16.mxu0 %vm1801_vm0, %v1800_v0 }
  0xce   : > { %1385 = vmatprep.subr.bf16.mxu0 %v1800_v0 }
  0xd1   : > { %1386 = vmatpush3.bf16.msra.mxu0 %v1587_v21 }
  0xd2   : > { %1387 = vmatprep.subr.bf16.mxu0 %v1800_v0 }
  0xd5   : > { %1388 = vmatpush3.bf16.msra.mxu0 %v1588_v22 }
  0xd6   : > { %1389 = vmatprep.subr.bf16.mxu0 %v1800_v0 }
  0xd9   : > { %1390 = vmatpush3.bf16.msra.mxu0 %v1589_v23 }
  0xda   : > { %1391 = vmatprep.subr.bf16.mxu0 %v1800_v0 }
  0xdd   : > { %1392 = vmatpush3.bf16.msra.mxu0 %v1590_v24 }
  0xde   : > { %1393 = vmatprep.subr.bf16.mxu0 %v1800_v0 }
  0xe1   : > { %1394 = vmatpush3.bf16.msra.mxu0 %v1591_v25 }
  0xe2   : > { %1395 = vmatprep.subr.bf16.mxu0 %v1800_v0 }
  0xe5   : > { %1396 = vmatpush3.bf16.msra.mxu0 %v1592_v26 }
  0xe6   : > { %1397 = vmatprep.subr.bf16.mxu0 %v1800_v0 }
  0xe9   : > { %1398 = vmatpush3.bf16.msra.mxu0 %v1593_v27 }
  0xec   : > { %1400 = vmatmul.mubr.bf16.vlgmr.msra.gmra.mrb[4].mxu0 %v442_v18 }
 0x19f   : > { %v548_v29 = vpop.f32.mrb[0].mxu0  ;;  %v698_v37 = vpop.f32.mrb[0].mxu1 }
 0x1a0   : > { %v549_v30 = vadd.f32 %v1245_v28, %v548_v29  ;;  %v1361_v31 = vpop.f32.mrb[1].mxu0  ;;  %v699_v38 = vadd.f32 %v1262_v32, %v698_v37  ;;  %v1381_v39 = vpop.f32.mrb[1].mxu1 }
 0x1a1   : > { %v551_v33 = vpop.f32.mrb[2].mxu0  ;;  %v701_v41 = vpop.f32.mrb[2].mxu1 }
 0x1a2   : > { %v1310_v34 = vpack.c.bf16 %v549_v30, %v549_v30  ;;  %v552_v35 = vadd.f32 %v1245_v28, %v551_v33  ;;  %v1362_v36 = vpop.f32.mrb[3].mxu0  ;;  %v1312_v42 = vpack.c.bf16 %v699_v38, %v699_v38  ;;  %v702_v43 = vadd.f32 %v1262_v32, %v701_v41  ;;  %v1382_v44 = vpop.f32.mrb[3].mxu1 }
 0x1a4   : > { %564 = vst.msk [vmem:[%s2174_s8] sm:$0xf] %vm563_vm1, %v1310_v34  ;;  %v1311_v40 = vpack.c.bf16 %v552_v35, %v552_v35  ;;  %575 = vrot.lane.b32.xlu1 %v1310_v34, %s1802_s1  ;;  %566 = vrot.lane.b32.xlu0 %v1310_v34, %s1803_s29  ;;  %713 = vst.msk [vmem:[%s2183_s18] sm:$0xf] %vm563_vm1, %v1312_v42  ;;  %v1313_v45 = vpack.c.bf16 %v702_v43, %v702_v43 }
 0x1a6   : > { %565 = vst.msk [vmem:[%s2174_s8 + $0x4] sm:$0xf] %vm563_vm1, %v1311_v40  ;;  %714 = vst.msk [vmem:[%s2183_s18 + $0x4] sm:$0xf] %vm563_vm1, %v1313_v45 }
 0x1a8   : > { %584 = vrot.lane.b32.xlu0 %v1310_v34, %s1804_s22  ;;  %577 = vrot.lane.b32.xlu1 %v1311_v40, %s1802_s1 }
 0x1ac   : > { %715 = vrot.lane.b32.xlu0 %v1312_v42, %s1803_s29  ;;  %586 = vrot.lane.b32.xlu1 %v1311_v40, %s1804_s22 }
 0x1b0   : > { %724 = vrot.lane.b32.xlu0 %v1312_v42, %s1802_s1  ;;  %717 = vrot.lane.b32.xlu1 %v1313_v45, %s1803_s29 }
 0x1b4   : > { %733 = vrot.lane.b32.xlu0 %v1312_v42, %s1804_s22  ;;  %726 = vrot.lane.b32.xlu1 %v1313_v45, %s1802_s1 }
 0x1b8   : > { %735 = vrot.lane.b32.xlu1 %v1313_v45, %s1804_s22  ;;  %568 = vrot.lane.b32.xlu0 %v1311_v40, %s1803_s29 }
 0x1bf   : > { %v847_v47 = vpop.f32.mrb[4].mxu0 }
 0x1c0   : > { %v848_v48 = vadd.f32 %v1279_v46, %v847_v47  ;;  %v1401_v49 = vpop.f32.mrb[5].mxu0 }
 0x1c1   : > { %v850_v50 = vpop.f32.mrb[6].mxu0 }
 0x1c2   : > { %v1314_v51 = vpack.c.bf16 %v848_v48, %v848_v48  ;;  %v851_v52 = vadd.f32 %v1279_v46, %v850_v50  ;;  %v1402_v53 = vpop.f32.mrb[7].mxu0 }
 0x1c4   : > { %862 = vst.msk [vmem:[%s2200_s7] sm:$0xf] %vm563_vm1, %v1314_v51  ;;  %v1315_v54 = vpack.c.bf16 %v851_v52, %v851_v52  ;;  %864 = vrot.lane.b32.xlu0 %v1314_v51, %s1803_s29 }
 0x1c6   : > { %863 = vst.msk [vmem:[%s2200_s7 + $0x4] sm:$0xf] %vm563_vm1, %v1315_v54  ;;  %866 = vrot.lane.b32.xlu1 %v1315_v54, %s1803_s29 }
 0x1c8   : > { %873 = vrot.lane.b32.xlu0 %v1314_v51, %s1802_s1 }
 0x1ca   : > { %875 = vrot.lane.b32.xlu1 %v1315_v54, %s1802_s1 }
 0x1cc   : > { %882 = vrot.lane.b32.xlu0 %v1314_v51, %s1804_s22 }
 0x1ce   : > { %884 = vrot.lane.b32.xlu1 %v1315_v54, %s1804_s22 }
 0x216   : > { %v576_v55 = vpop.permute.xlu1 %575  ;;  %v567_v56 = vpop.permute.xlu0 %566 }
 0x217   : > { %1258 = vst.msk [vmem:[%s2174_s8 + $0x10] sm:$0xf] %vm563_vm1, %v576_v55  ;;  %1256 = vst.msk [vmem:[%s2174_s8 + $0x8] sm:$0xf] %vm563_vm1, %v567_v56 }
 0x21a   : > { %v585_v57 = vpop.permute.xlu0 %584  ;;  %v578_v58 = vpop.permute.xlu1 %577 }
 0x21b   : > { %1260 = vst.msk [vmem:[%s2174_s8 + $0x18] sm:$0xf] %vm563_vm1, %v585_v57  ;;  %1259 = vst.msk [vmem:[%s2174_s8 + $0x14] sm:$0xf] %vm563_vm1, %v578_v58 }
 0x21e   : > { %v716_v59 = vpop.permute.xlu0 %715  ;;  %v587_v60 = vpop.permute.xlu1 %586 }
 0x21f   : > { %1273 = vst.msk [vmem:[%s2183_s18 + $0x8] sm:$0xf] %vm563_vm1, %v716_v59  ;;  %1261 = vst.msk [vmem:[%s2174_s8 + $0x1c] sm:$0xf] %vm563_vm1, %v587_v60 }
 0x222   : > { %v725_v61 = vpop.permute.xlu0 %724  ;;  %v718_v62 = vpop.permute.xlu1 %717 }
 0x223   : > { %1275 = vst.msk [vmem:[%s2183_s18 + $0x10] sm:$0xf] %vm563_vm1, %v725_v61  ;;  %1274 = vst.msk [vmem:[%s2183_s18 + $0xc] sm:$0xf] %vm563_vm1, %v718_v62 }
 0x226   : > { %v734_v63 = vpop.permute.xlu0 %733  ;;  %v727_v0 = vpop.permute.xlu1 %726 }
 0x227   : > { %1277 = vst.msk [vmem:[%s2183_s18 + $0x18] sm:$0xf] %vm563_vm1, %v734_v63  ;;  %1276 = vst.msk [vmem:[%s2183_s18 + $0x14] sm:$0xf] %vm563_vm1, %v727_v0 }
 0x22a   : > { %v736_v1 = vpop.permute.xlu1 %735  ;;  %v569_v2 = vpop.permute.xlu0 %568 }
 0x22b   : > { %1278 = vst.msk [vmem:[%s2183_s18 + $0x1c] sm:$0xf] %vm563_vm1, %v736_v1  ;;  %1257 = vst.msk [vmem:[%s2174_s8 + $0xc] sm:$0xf] %vm563_vm1, %v569_v2 }
 0x236   : > { %v865_v3 = vpop.permute.xlu0 %864 }
 0x237   : > { %1290 = vst.msk [vmem:[%s2200_s7 + $0x8] sm:$0xf] %vm563_vm1, %v865_v3 }
 0x238   : > { %v867_v4 = vpop.permute.xlu1 %866 }
 0x239   : > { %1291 = vst.msk [vmem:[%s2200_s7 + $0xc] sm:$0xf] %vm563_vm1, %v867_v4 }
 0x23a   : > { %v874_v5 = vpop.permute.xlu0 %873 }
 0x23b   : > { %1292 = vst.msk [vmem:[%s2200_s7 + $0x10] sm:$0xf] %vm563_vm1, %v874_v5 }
 0x23c   : > { %v876_v6 = vpop.permute.xlu1 %875 }
 0x23d   : > { %1293 = vst.msk [vmem:[%s2200_s7 + $0x14] sm:$0xf] %vm563_vm1, %v876_v6 }
 0x23e   : > { %v883_v7 = vpop.permute.xlu0 %882 }
 0x23f   : > { %1294 = vst.msk [vmem:[%s2200_s7 + $0x18] sm:$0xf] %vm563_vm1, %v883_v7 }
 0x240   : > { %v885_v8 = vpop.permute.xlu1 %884 }
 0x241   : > { %1295 = vst.msk [vmem:[%s2200_s7 + $0x1c] sm:$0xf] %vm563_vm1, %v885_v8 }
 0x242   : > { %s2390_s24 = sld [smem:[#allocation26_spill]]  ;;  %s2391_s3 = sld [smem:[#allocation27_spill]] }
 0x243   : > { %s933_s12 = sshll.u32 %s2174_s8, 4  ;;  %s2392_s29 = sld [smem:[#allocation33_spill]]  ;;  %s934_s12 = int_to_ptr.vmem [resolvable:$true] %s933_s12 }
 0x244   : > { %s1805_s25 = smov 128   ;;  %s1806_s27 = smov 256  }
 0x245   : > { %1417 = sst [smem:[#allocation15]] (%p2049_p3), %s1805_s25  ;;  %s1807_s30 = smov 2  }
 0x246   : > { %1418 = sst [smem:[#allocation15 + $0x1]] (%p2049_p3), %s1806_s27  ;;  %s1809_s8 = smov 4  }
 0x247   : > { %1419 = sst [smem:[#allocation15 + $0x2]] (%p2049_p3), %s1807_s30 }
 0x248   : > { %s1299_s19 = sshll.u32 %s2390_s24, 1  ;;  %s1300_s21 = sshll.u32 %s2391_s3, 4 }
 0x249   : > { %s914_s23 = sadd.s32 %s1300_s21, %s1299_s19  ;;  %s1808_s24 = smov 64  }
 0x24a   : > { %s2254_s1 = sshll.u32 %s914_s23, 6  ;;  %1420 = sst [smem:[#allocation15 + $0x3]] (%p2049_p3), %s1808_s24 }
 0x24b   : > { %s916_s22 = scalar_lea.hbm %s2392_s29, %s2254_s1  ;;  %1421 = sst [smem:[#allocation15 + $0x4]] (%p2049_p3), %s1808_s24 }
 0x24c   : > { %1422 = sst [smem:[#allocation15 + $0x5]] (%p2049_p3), %s1809_s8  ;;  %s1810_s3 = smov [#allocation14]  }
 0x24d   : > { %s1811_s19 = smov 0  }
 0x24e   : > { %1423 = dma.general (%p2049_p3), %s934_s12, 512, %s916_s22, %s892_s28, %s1810_s3, [#allocation15], %s1811_s19, 0  }
 0x24f   : > { %s2393_s17 = sld [smem:[#allocation34_spill]]  ;;  %s980_s29 = sshll.u32 %s2183_s18, 4  ;;  %s981_s29 = int_to_ptr.vmem [resolvable:$true] %s980_s29 }
 0x250   : > { %s1812_s25 = smov 128   ;;  %s1813_s28 = smov 256  }
 0x251   : > { %1424 = sst [smem:[#allocation17]] (%p2049_p3), %s1812_s25  ;;  %s1814_s12 = smov 2  }
 0x252   : > { %1425 = sst [smem:[#allocation17 + $0x1]] (%p2049_p3), %s1813_s28  ;;  %s1815_s22 = smov 64  }
 0x253   : > { %1426 = sst [smem:[#allocation17 + $0x2]] (%p2049_p3), %s1814_s12  ;;  %s1816_s27 = smov 4  }
 0x254   : > { %1427 = sst [smem:[#allocation17 + $0x3]] (%p2049_p3), %s1815_s22  ;;  %s1817_s30 = smov [#allocation16]  }
 0x255   : > { %s963_s20 = scalar_lea.hbm %s2393_s17, %s2254_s1  ;;  %1428 = sst [smem:[#allocation17 + $0x4]] (%p2049_p3), %s1815_s22 }
 0x256   : > { %1429 = sst [smem:[#allocation17 + $0x5]] (%p2049_p3), %s1816_s27  ;;  %s1818_s18 = smov 0  }
 0x257   : > { %1430 = dma.general (%p2049_p3), %s981_s29, 512, %s963_s20, %s2249_s5, %s1817_s30, [#allocation17], %s1818_s18, 0  }
 0x258   : > { %s2394_s3 = sld [smem:[#allocation35_spill]]  ;;  %s1027_s21 = sshll.u32 %s2200_s7, 4  ;;  %s1028_s21 = int_to_ptr.vmem [resolvable:$true] %s1027_s21 }
 0x259   : > { %s1819_s23 = smov 128   ;;  %s1820_s17 = smov 256  }
 0x25a   : > { %1431 = sst [smem:[#allocation19]] (%p2049_p3), %s1819_s23  ;;  %s1821_s20 = smov 2  }
 0x25b   : > { %1432 = sst [smem:[#allocation19 + $0x1]] (%p2049_p3), %s1820_s17  ;;  %s1822_s29 = smov 64  }
 0x25c   : > { %1433 = sst [smem:[#allocation19 + $0x2]] (%p2049_p3), %s1821_s20  ;;  %s1823_s25 = smov 4  }
 0x25d   : > { %1434 = sst [smem:[#allocation19 + $0x3]] (%p2049_p3), %s1822_s29  ;;  %s1825_s7 = smov 0  }
 0x25e   : > { %s1010_s19 = scalar_lea.hbm %s2394_s3, %s2254_s1  ;;  %1435 = sst [smem:[#allocation19 + $0x4]] (%p2049_p3), %s1822_s29 }
 0x25f   : > { %1436 = sst [smem:[#allocation19 + $0x5]] (%p2049_p3), %s1823_s25  ;;  %s1824_s1 = smov [#allocation18]  }
 0x260   : > { %1437 = dma.general (%p2049_p3), %s1028_s21, 512, %s1010_s19, %s2249_s5, %s1824_s1, [#allocation19], %s1825_s7, 0  }
 0x261 PF: > { %s2395_s28 = sld [smem:[#allocation25_spill]]  ;;  %s2396_s12 = sld [smem:[#allocation28_spill]] }
 0x262   : > { %p1472_p5 = scmp.ge.s32.totalorder %s1790_s16, 2 }
 0x267   : > { %s1055_s22 = sand.u32 1, %s2395_s28   ;;  %p2397_p7 = scmp.ne.s32.totalorder %s2396_s12, 0 }
 0x268   : > { %s1056_s27 = scalar_lea.sflag [#allocation4], %s1055_s22 }
 0x269   : > { %p1456_p11 = pnand %p1472_p5, %p2397_p7 }
 0x26b   : > { %1753 = dma.done.wait (!%p1456_p11), %s1056_s27, 512  }
 0x26c   : > { %1755 = vsyncadd (!%p1456_p11), %s1056_s27, 4294966784  ;;  %s2398_s30 = sadd.s32 4294967294, %s1790_s16  }
 0x26d   : > { %s1064_s18 = sand.u32 1, %s2398_s30  }
 0x26e   : > { %s1065_s24 = scalar_lea.sflag [#allocation12], %s1064_s18 }
 0x26f   : > { %1757 = dma.done.wait (!%p1456_p11), %s1065_s24, 1024  }
 0x270   : > { %1759 = vsyncadd (!%p1456_p11), %s1065_s24, 4294966272  ;;  %s31_s16 = sadd.s32 1, %s1790_s16   ;;  %s2399_s5 = sld [smem:[#allocation29_spill]] }
 0x271   : > { %p28_p3 = scmp.ge.s32.totalorder %s31_s16, 6   ;;  %s2400_s30 = smov %s1766_s10 }
 0x272   : > { %s2401_s10 = smov %s1770_s11  ;;  %s2402_s11 = smov %s2066_s26 }
 0x273   : > { %s2403_s12 = smov %s1782_s14  ;;  %s2404_s13 = smov %s1786_s15 }
 0x274   : > { %s2405_s14 = smov %s2408_s9  ;;  %30 = sbr.rel (!%p28_p3) target bundleno = 18 (0x12), region = 161 }
 0x276   : > { %s2406_s15 = smov %s2399_s5 }
 0x27b   :  { %1079 = vsyncpa [#allocation3], 1 }
 0x27c   :  { %1081 = vsyncpa [#allocation3 + $0x1], 1 }
 0x27d   :  { %1082 = vsyncpa [#allocation6], 1 }
 0x27e   :  { %1083 = vsyncpa [#allocation9], 1 }
 0x27f   :  { %1084 = vsyncpa [#allocation4], 1 }
 0x280   :  { %1086 = vsyncpa [#allocation4 + $0x1], 1 }
 0x281   :  { %1087 = vsyncpa [#allocation12], 1 }
 0x282   :  { %1089 = vsyncpa [#allocation12 + $0x1], 1 }

// kernel: tpu_custom_call.1
= control target key start
LH: loop header
LB: loop body
LE: loop exit
PB: predicated region body
PF: predicated region fallthrough
CT: control target
= control target key end

     0   :  { %s2344_s0 = inlined_call_operand.hbm [shape: f32[2,32,128], index: 0, kind: input, shape index: {}]   ;;  %s2345_s1 = inlined_call_operand.hbm [shape: bf16[128,128], index: 1, kind: input, shape index: {}]   ;;  %s2346_s2 = inlined_call_operand.vmem [shape: f32[1,128], index: 2, kind: input, shape index: {}]   ;;  %s2347_s3 = inlined_call_operand.hbm [shape: bf16[128,128], index: 3, kind: input, shape index: {}]   ;;  %s2348_s4 = inlined_call_operand.vmem [shape: f32[1,128], index: 4, kind: input, shape index: {}]   ;;  %s2349_s5 = inlined_call_operand.hbm [shape: bf16[128,128], index: 5, kind: input, shape index: {}]   ;;  %s2350_s6 = inlined_call_operand.vmem [shape: f32[1,128], index: 6, kind: input, shape index: {}]   ;;  %s2351_s7 = inlined_call_operand.hbm [shape: bf16[2,4,32,32], index: 7, kind: output, shape index: {0}]   ;;  %s2352_s8 = inlined_call_operand.hbm [shape: bf16[2,4,32,32], index: 8, kind: output, shape index: {1}]   ;;  %s2353_s9 = inlined_call_operand.hbm [shape: bf16[2,4,32,32], index: 9, kind: output, shape index: {2}]  }
   0x1   :  { %2361 = sst [smem:[#allocation30_spill]] %s2345_s1 }
   0x2   :  { %2362 = sst [smem:[#allocation31_spill]] %s2347_s3 }
   0x3   :  { %2363 = sst [smem:[#allocation32_spill]] %s2349_s5 }
   0x4   :  { %2364 = sst [smem:[#allocation33_spill]] %s2351_s7 }
   0x5   :  { %2365 = sst [smem:[#allocation34_spill]] %s2352_s8 }
   0x6   :  { %2366 = sst [smem:[#allocation35_spill]] %s2353_s9 }
   0x7   :  { %15 = vsyncpa [#allocation3], 0 }
   0x8   :  { %17 = vsyncpa [#allocation3 + $0x1], 0 }
   0x9   :  { %18 = vsyncpa [#allocation6], 0 }
   0xa   :  { %19 = vsyncpa [#allocation9], 0 }
   0xb   :  { %20 = vsyncpa [#allocation4], 0 }
   0xc   :  { %22 = vsyncpa [#allocation4 + $0x1], 0 }
   0xd   :  { %23 = vsyncpa [#allocation12], 0 }
   0xe   :  { %25 = vsyncpa [#allocation12 + $0x1], 0  ;;  %s1876_s30 = smov 0   ;;  %s1878_s10 = smov 0  }
   0xf   :  { %s1880_s11 = smov 0   ;;  %s1882_s12 = smov 0  }
  0x10   :  { %s1884_s13 = smov 0   ;;  %s1886_s14 = smov 0  }
  0x11   :  { %s1888_s15 = smov 0   ;;  %s1890_s16 = smov 0  }
  0x12 LB: > { %2367 = sst [smem:[#allocation25_spill]] %s1762_s30  ;;  %s1917_s17 = sadd.s32 4294967295, %s1790_s16   ;;  %s1790_s16 = sphi %s1890_s16, %s31_s16   ;;  %s1786_s15 = sphi %s1888_s15, %s2406_s15   ;;  %s1782_s14 = sphi %s1886_s14, %s2405_s14   ;;  %s1778_s13 = sphi %s1884_s13, %s2404_s13   ;;  %s1774_s12 = sphi %s1882_s12, %s2403_s12   ;;  %s1770_s11 = sphi %s1880_s11, %s2402_s11   ;;  %s1766_s10 = sphi %s1878_s10, %s2401_s10   ;;  %s1762_s30 = sphi %s1876_s30, %s2400_s30  }
  0x13   : > { %2368 = sst [smem:[#allocation26_spill]] %s1774_s12  ;;  %s2354_s18 = sadd.s32 4294967294, %s1790_s16  }
  0x14   : > { %2369 = sst [smem:[#allocation27_spill]] %s1778_s13  ;;  %p65_p0 = scmp.ne.s32.totalorder %s1766_s10, %s1762_s30 }
  0x15   : > { %p2357_p1 = scmp.eq.s32.totalorder %s1917_s17, 0  ;;  %p223_p3 = scmp.eq.s32.totalorder %s2354_s18, 3 }
  0x16   : > { %p1228_p5 = scmp.ge.s32.totalorder %s1790_s16, 1  ;;  %p286_p7 = scmp.lt.s32.totalorder %s1790_s16, 5 }
  0x17   : > { %p1928_p4 = por %p2357_p1, %p65_p0  ;;  %p1933_p6 = por %p223_p3, %p65_p0 }
  0x18   : > { %p1938_p8 = pnand %p1228_p5, %p286_p7  ;;  %s1792_s22 = smov [#allocation5]  }
  0x19   : > { %s2370_s19 = scalar_select %p1928_p4, 1, 0 }
  0x1a   : > { %s2371_s20 = scalar_select %p1933_p6, 1, 0 }
  0x1b   : > { %s2373_s21 = scalar_select %p1938_p8, 1, 0 }
  0x1c   : > { %2372 = sst [smem:[#allocation28_spill]] %s2371_s20  ;;  %s298_s23 = sshll.u32 %s1792_s22, 4  ;;  %s1942_s23 = int_to_ptr.vmem [resolvable:$true] %s298_s23 }
  0x1d   : > { %p1441_p9 = pneg %p1938_p8  ;;  %s1793_s25 = smov [#allocation7]  }
  0x1e   : > { %s314_s26 = sshll.u32 %s1793_s25, 4  ;;  %s1794_s27 = smov [#allocation8]   ;;  %s1952_s26 = int_to_ptr.vmem [resolvable:$true] %s314_s26 }
  0x1f   : > { %p1948_p10 = pnand %p1441_p9, %p2357_p1  ;;  %s1954_s28 = sshll.u32 %s1794_s27, 4  ;;  %s331_s28 = int_to_ptr.vmem [resolvable:$true] %s1954_s28 }
  0x20   : > { %s2375_s1 = sld [smem:[#allocation30_spill]] }
  0x21   : > { %p1964_p12 = pneg %p1948_p10 }
  0x26   : > { %s1594_s22 = scalar_lea.hbm %s2375_s1, 1024 }
  0x27   : > { %p1595_p11 = scmp.ne.s32.totalorder %s2375_s1, %s1594_s22  ;;  %p1601_p3 = scmp.lt.u32.totalorder %s1594_s22, %s2375_s1 }
  0x29   : > { %p1597_p13 = pnand %p1964_p12, %p1595_p11 }
  0x2b   : > { %p1598_p0 = pneg %p1597_p13 }
  0x2d   : > { %p1603_p5 = pnand %p1601_p3, %p1598_p0 }
  0x2f   : > { %1606 = shalt.err (!%p1603_p5)
}
  0x30   : > { %s1607_s30 = scalar_lea.vmem %s1942_s23, 1024  ;;  %p1615_p2 = scmp.lt.s32.totalorder %s1942_s23, %s1942_s23 }
  0x31   : > { %p1608_p7 = scmp.ne.s32.totalorder %s1942_s23, %s1607_s30  ;;  %p1616_p6 = scmp.lt.s32.totalorder %s1607_s30, %s1607_s30 }
  0x33   : > { %p1610_p9 = pnand %p1608_p7, %p1964_p12  ;;  %p1617_p11 = por %p1616_p6, %p1615_p2 }
  0x35   : > { %p1611_p1 = pneg %p1610_p9 }
  0x37   : > { %p1618_p13 = pnand %p1617_p11, %p1611_p1 }
  0x39   : > { %1621 = shalt.err (!%p1618_p13)
}
  0x3a   : > { %s1795_s18 = smov 64   ;;  %s1796_s20 = smov 4  }
  0x3b   : > { %1444 = dma.hbm_to_vmem [thread:$0]  (!%p1948_p10), %s2375_s1, 1024, %s1942_s23, [#allocation6], %s1795_s18, %s1795_s18, %s1796_s20  }
  0x3c   : > { %s2377_s3 = sld [smem:[#allocation31_spill]] }
  0x42   : > { %s1622_s30 = scalar_lea.hbm %s2377_s3, 1024 }
  0x43   : > { %p1623_p1 = scmp.ne.s32.totalorder %s2377_s3, %s1622_s30  ;;  %p1629_p0 = scmp.lt.u32.totalorder %s1622_s30, %s2377_s3 }
  0x45   : > { %p1625_p2 = pnand %p1623_p1, %p1964_p12 }
  0x47   : > { %p1626_p6 = pneg %p1625_p2 }
  0x49   : > { %p1631_p3 = pnand %p1629_p0, %p1626_p6 }
  0x4b   : > { %1634 = shalt.err (!%p1631_p3)
}
  0x4c   : > { %s1635_s23 = scalar_lea.vmem %s1952_s26, 1024  ;;  %p1643_p11 = scmp.lt.s32.totalorder %s1952_s26, %s1952_s26 }
  0x4d   : > { %p1636_p5 = scmp.ne.s32.totalorder %s1952_s26, %s1635_s23  ;;  %p1644_p13 = scmp.lt.s32.totalorder %s1635_s23, %s1635_s23 }
  0x4f   : > { %p1638_p7 = pnand %p1636_p5, %p1964_p12  ;;  %p1645_p1 = por %p1644_p13, %p1643_p11 }
  0x51   : > { %p1639_p9 = pneg %p1638_p7 }
  0x53   : > { %p1646_p2 = pnand %p1645_p1, %p1639_p9 }
  0x55   : > { %1649 = shalt.err (!%p1646_p2)
}
  0x56   : > { %1447 = dma.hbm_to_vmem [thread:$0]  (!%p1948_p10), %s2377_s3, 1024, %s1952_s26, [#allocation6], %s1795_s18, %s1795_s18, %s1796_s20  }
  0x57   : > { %s2378_s5 = sld [smem:[#allocation32_spill]] }
  0x5d   : > { %s1650_s29 = scalar_lea.hbm %s2378_s5, 1024 }
  0x5e   : > { %p1651_p6 = scmp.ne.s32.totalorder %s2378_s5, %s1650_s29  ;;  %p1657_p5 = scmp.lt.u32.totalorder %s1650_s29, %s2378_s5 }
  0x60   : > { %p1653_p0 = pnand %p1651_p6, %p1964_p12 }
  0x62   : > { %p1654_p3 = pneg %p1653_p0 }
  0x64   : > { %p1659_p7 = pnand %p1657_p5, %p1654_p3 }
  0x66   : > { %1662 = shalt.err (!%p1659_p7)
}
  0x67   : > { %s1663_s23 = scalar_lea.vmem %s331_s28, 1024  ;;  %p1671_p1 = scmp.lt.s32.totalorder %s331_s28, %s331_s28 }
  0x68   : > { %p1664_p9 = scmp.ne.s32.totalorder %s331_s28, %s1663_s23  ;;  %p1672_p2 = scmp.lt.s32.totalorder %s1663_s23, %s1663_s23 }
  0x6a   : > { %p1666_p11 = pnand %p1664_p9, %p1964_p12  ;;  %p1673_p4 = por %p1672_p2, %p1671_p1 }
  0x6c   : > { %p1667_p13 = pneg %p1666_p11 }
  0x6e   : > { %p1674_p8 = pnand %p1673_p4, %p1667_p13 }
  0x70   : > { %1677 = shalt.err (!%p1674_p8)
}
  0x71   : > { %1450 = dma.hbm_to_vmem [thread:$0]  (!%p1948_p10), %s2378_s5, 1024, %s331_s28, [#allocation9], %s1795_s18, %s1795_s18, %s1796_s20  }
  0x72   : > { %s40_s9 = sadd.s32 1, %s1782_s14  ;;  %s43_s24 = sadd.s32 1, %s1786_s15 }
  0x73   : > { %p41_p4 = scmp.ge.s32.totalorder %s40_s9, 2  ;;  %s52_s8 = sadd.s32 1, %s1770_s11 }
  0x74   : > { %p59_p8 = scmp.ne.s32.totalorder %s1770_s11, %s1766_s10  ;;  %p60_p12 = scmp.eq.s32.totalorder %s1790_s16, 0 }
  0x75   : > { %s2408_s9 = smov (%p41_p4, %s40_s9), 0  ;;  %s2410_s24 = smov (!%p41_p4, %s43_s24), %s1786_s15 }
  0x76   : > { %s48_s12 = ssub.s32 %s1782_s14, %s2408_s9  ;;  %p45_p6 = scmp.ge.s32.totalorder %s2410_s24, 2 }
  0x77   : > { %p2379_p0 = scmp.eq.s32.totalorder %s1917_s17, 3  ;;  %p2053_p10 = por %p60_p12, %p59_p8 }
  0x78   : > { %p1468_p5 = scmp.lt.s32.totalorder %s1790_s16, 4  ;;  %s2412_s24 = smov (%p45_p6, %s2410_s24), 0 }
  0x79   : > { %p2049_p3 = por %p2379_p0, %p59_p8  ;;  %2382 = sst [smem:[#allocation29_spill]] %s2412_s24 }
  0x7a   : > { %s347_s18 = sand.u32 1, %s1770_s11   ;;  %s1234_s20 = sshll.u32 %s1782_s14, 1 }
  0x7b   : > { %s47_s29 = ssub.s32 %s1786_s15, %s2412_s24  ;;  %s1233_s25 = sshll.u32 %s347_s18, 4 }
  0x7c   : > { %s49_s22 = sor.u32 %s48_s12, %s47_s29  ;;  %s1235_s27 = sshll.u32 %s1786_s15, 2 }
  0x7d   : > { %p50_p7 = scmp.eq.s32.totalorder %s49_s22, 0  ;;  %s351_s30 = scalar_lea.vmem [#allocation2], %s1233_s25 }
  0x7e   : > { %s360_s23 = sshll.u32 %s351_s30, 4  ;;  %s357_s7 = sadd.s32 %s1235_s27, %s1234_s20  ;;  %s2068_s23 = int_to_ptr.vmem [resolvable:$true] %s360_s23 }
  0x7f   : > { %s2066_s26 = scalar_select %p50_p7, %s1770_s11, %s52_s8  }
  0x80   : > { %s1236_s1 = sshll.u32 %s357_s7, 7  ;;  %p2074_p9 = pnand %p1468_p5, %p2053_p10 }
  0x81   : > { %s2081_s12 = scalar_lea.hbm %s2344_s0, %s1236_s1  ;;  %s2083_s8 = scalar_lea.sflag [#allocation3], %s347_s18 }
  0x82   : > { %s1678_s20 = scalar_lea.hbm %s2081_s12, 256  ;;  %p1680_p13 = pneg %p2074_p9 }
  0x83   : > { %p1679_p11 = scmp.ne.s32.totalorder %s2081_s12, %s1678_s20  ;;  %s1683_s24 = scalar_lea.hbm %s2344_s0, 1024 }
  0x84   : > { %p1684_p4 = scmp.lt.u32.totalorder %s2081_s12, %s2344_s0  ;;  %p1685_p8 = scmp.lt.u32.totalorder %s1683_s24, %s1678_s20 }
  0x85   : > { %p1681_p1 = pnand %p1680_p13, %p1679_p11  ;;  %p1687_p6 = scmp.lt.u32.totalorder %s1678_s20, %s2081_s12 }
  0x86   : > { %p1686_p12 = por %p1685_p8, %p1684_p4 }
  0x87   : > { %p1682_p2 = pneg %p1681_p1 }
  0x88   : > { %p1688_p0 = por %p1687_p6, %p1686_p12 }
  0x8a   : > { %p1689_p10 = pnand %p1688_p0, %p1682_p2 }
  0x8c   : > { %1692 = shalt.err (!%p1689_p10)
}
  0x8d   : > { %s1693_s18 = scalar_lea.vmem %s2068_s23, 256  ;;  %s1797_s22 = smov [#allocation2]  }
  0x8e   : > { %p1694_p5 = scmp.ne.s32.totalorder %s2068_s23, %s1693_s18  ;;  %s1698_s25 = sshll.u32 %s1797_s22, 4  ;;  %s1699_s25 = int_to_ptr.vmem [resolvable:$false] %s1698_s25 }
  0x8f   : > { %s1700_s27 = scalar_lea.vmem %s1699_s25, 512  ;;  %p1701_p1 = scmp.lt.s32.totalorder %s2068_s23, %s1699_s25 }
  0x90   : > { %p1696_p7 = pnand %p1694_p5, %p1680_p13  ;;  %p1702_p4 = scmp.lt.s32.totalorder %s1700_s27, %s1693_s18 }
  0x92   : > { %p1697_p11 = pneg %p1696_p7  ;;  %p1703_p8 = por %p1702_p4, %p1701_p1 }
  0x94   : > { %p1704_p12 = pnand %p1703_p8, %p1697_p11 }
  0x96   : > { %1707 = shalt.err (!%p1704_p12)
}
  0x97   : > { %s1798_s30 = smov 128   ;;  %s1799_s7 = smov 8  }
  0x98   : > { %1454 = dma.hbm_to_vmem [thread:$0]  (!%p2074_p9), %s2081_s12, 256, %s2068_s23, %s2083_s8, %s1798_s30, %s1798_s30, %s1799_s7  }
  0x99   : > { %p2384_p13 = scmp.ne.s32.totalorder %s2373_s21, 0 }
  0x9a   : > { %s2114_s20 = sand.u32 (!%p2384_p13), 1, %s1766_s10   ;;  %p2385_p2 = scmp.ne.s32.totalorder (!%p2384_p13), %s2370_s19, 0 }
  0x9b   : > { %372 = sbr.rel (%p2384_p13) target bundleno = 609 (0x261), region = 48  ;;  %s1238_s28 = sshll.u32 (!%p2384_p13), %s2114_s20, 4 }
  0x9c   : > { %s375_s5 = scalar_lea.sflag (!%p2384_p13), [#allocation3], %s2114_s20  ;;  %s2118_s24 = scalar_lea.vmem (!%p2384_p13), [#allocation2], %s1238_s28 }
  0xa2   : > { %1741 = dma.done.wait (%p2385_p2), %s375_s5, 256  }
  0xa3   : > { %1743 = vsyncadd (%p2385_p2), %s375_s5, 4294967040  ;;  %p2386_p9 = scmp.eq.s32.totalorder %s1917_s17, 0 }
  0xa5   : > { %1745 = dma.done.wait (%p2386_p9), [#allocation6], 2048   ;;  %p2387_p6 = pmov %p2386_p9 }
  0xa7   : > { %1747 = vsyncadd (%p2387_p6), [#allocation6], 4294965248  ;;  %p2388_p0 = pmov %p2387_p6 }
  0xa9   : > { %1749 = dma.done.wait (%p2388_p0), [#allocation9], 1024   ;;  %p2389_p10 = pmov %p2388_p0 }
  0xaa   : > { %v1800_v0 = vmov 0.0   ;;  %vm1801_vm0 = vmmov 0   ;;  %v1570_v1 = vld [vmem:[#allocation5] sm:$0xff]   ;;  %v1571_v2 = vld [vmem:[#allocation5 + $0x8] sm:$0xff]   ;;  %v1572_v5 = vld [vmem:[#allocation5 + $0x10] sm:$0xff]   ;;  %s2165_s3 = sshll.u32 %s2114_s20, 5 }
  0xab   : > { %1751 = vsyncadd (%p2389_p10), [#allocation9], 4294966272  ;;  %1343 = vmatprep.subr.bf16.mxu0 %v1800_v0  ;;  %1363 = vmatprep.subr.bf16.mxu1 %v1800_v0  ;;  %v1573_v3 = vld [vmem:[#allocation7] sm:$0xff]   ;;  %v1575_v4 = vld [vmem:[#allocation7 + $0x8] sm:$0xff]   ;;  %vm563_vm1 = vcmask 257024   ;;  %s2174_s8 = scalar_lea.vmem [#allocation10], %s2165_s3 }
  0xac   : > { %1359 = vmatprep.mubr.msk.bf16.mxu0 %vm1801_vm0, %v1800_v0  ;;  %1379 = vmatprep.mubr.msk.bf16.mxu1 %vm1801_vm0, %v1800_v0  ;;  %v1577_v6 = vld [vmem:[#allocation7 + $0x10] sm:$0xff]   ;;  %v1574_v7 = vld [vmem:[#allocation5 + $0x18] sm:$0xff]   ;;  %v1576_v9 = vld [vmem:[#allocation5 + $0x20] sm:$0xff]   ;;  %s1802_s1 = smov 64   ;;  %s1803_s29 = smov 96  }
  0xad   : > { %1344 = vmatpush3.bf16.msra.mxu0 %v1570_v1  ;;  %1364 = vmatpush3.bf16.msra.mxu1 %v1573_v3  ;;  %v1579_v8 = vld [vmem:[#allocation7 + $0x18] sm:$0xff]   ;;  %v1581_v10 = vld [vmem:[#allocation7 + $0x20] sm:$0xff]   ;;  %v1578_v11 = vld [vmem:[#allocation5 + $0x28] sm:$0xff]   ;;  %s2183_s18 = scalar_lea.vmem [#allocation11], %s2165_s3  ;;  %s1804_s22 = smov 32  }
  0xae   : > { %1345 = vmatprep.subr.bf16.mxu0 %v1800_v0  ;;  %1365 = vmatprep.subr.bf16.mxu1 %v1800_v0  ;;  %v1583_v12 = vld [vmem:[#allocation7 + $0x28] sm:$0xff]   ;;  %v1580_v13 = vld [vmem:[#allocation5 + $0x30] sm:$0xff]   ;;  %v1582_v15 = vld [vmem:[#allocation5 + $0x38] sm:$0xff]   ;;  %s896_s30 = sand.u32 1, %s1917_s17   ;;  %s2200_s7 = scalar_lea.vmem [#allocation13], %s2165_s3 }
  0xaf   : > { %v1584_v14 = vld [vmem:[#allocation7 + $0x30] sm:$0xff]   ;;  %v441_v17 = vld [vmem:[%s2118_s24 + $0x8] sm:$0xff]  ;;  %v1585_v20 = vld [vmem:[#allocation8] sm:$0xff]   ;;  %s892_s28 = scalar_lea.sflag [#allocation4], %s2114_s20  ;;  %s2249_s5 = scalar_lea.sflag [#allocation12], %s896_s30 }
  0xb0   : > { %v440_v16 = vld [vmem:[%s2118_s24] sm:$0xff]  ;;  %v1586_v19 = vld [vmem:[#allocation7 + $0x38] sm:$0xff]   ;;  %v1587_v21 = vld [vmem:[#allocation8 + $0x8] sm:$0xff]  }
  0xb1   : > { %1346 = vmatpush3.bf16.msra.mxu0 %v1571_v2  ;;  %1366 = vmatpush3.bf16.msra.mxu1 %v1575_v4  ;;  %v442_v18 = vpack.c.bf16 %v441_v17, %v440_v16  ;;  %v1588_v22 = vld [vmem:[#allocation8 + $0x10] sm:$0xff]   ;;  %v1589_v23 = vld [vmem:[#allocation8 + $0x18] sm:$0xff]   ;;  %v1590_v24 = vld [vmem:[#allocation8 + $0x20] sm:$0xff]  }
  0xb2   : > { %1347 = vmatprep.subr.bf16.mxu0 %v1800_v0  ;;  %1367 = vmatprep.subr.bf16.mxu1 %v1800_v0  ;;  %v1591_v25 = vld [vmem:[#allocation8 + $0x28] sm:$0xff]   ;;  %v1592_v26 = vld [vmem:[#allocation8 + $0x30] sm:$0xff]   ;;  %v1593_v27 = vld [vmem:[#allocation8 + $0x38] sm:$0xff]  }
  0xb3   : > { %v1245_v28 = vld [vmem:[%s2346_s2] ss:$0 sm:$0xff] }
  0xb4   : > { %v1262_v32 = vld [vmem:[%s2348_s4] ss:$0 sm:$0xff] }
  0xb5   : > { %1348 = vmatpush3.bf16.msra.mxu0 %v1572_v5  ;;  %1368 = vmatpush3.bf16.msra.mxu1 %v1577_v6  ;;  %v1279_v46 = vld [vmem:[%s2350_s6] ss:$0 sm:$0xff] }
  0xb6   : > { %1349 = vmatprep.subr.bf16.mxu0 %v1800_v0  ;;  %1369 = vmatprep.subr.bf16.mxu1 %v1800_v0 }
  0xb9   : > { %1350 = vmatpush3.bf16.msra.mxu0 %v1574_v7  ;;  %1370 = vmatpush3.bf16.msra.mxu1 %v1579_v8 }
  0xba   : > { %1351 = vmatprep.subr.bf16.mxu0 %v1800_v0  ;;  %1371 = vmatprep.subr.bf16.mxu1 %v1800_v0 }
  0xbd   : > { %1352 = vmatpush3.bf16.msra.mxu0 %v1576_v9  ;;  %1372 = vmatpush3.bf16.msra.mxu1 %v1581_v10 }
  0xbe   : > { %1353 = vmatprep.subr.bf16.mxu0 %v1800_v0  ;;  %1373 = vmatprep.subr.bf16.mxu1 %v1800_v0 }
  0xc1   : > { %1354 = vmatpush3.bf16.msra.mxu0 %v1578_v11  ;;  %1374 = vmatpush3.bf16.msra.mxu1 %v1583_v12 }
  0xc2   : > { %1355 = vmatprep.subr.bf16.mxu0 %v1800_v0  ;;  %1375 = vmatprep.subr.bf16.mxu1 %v1800_v0 }
  0xc5   : > { %1356 = vmatpush3.bf16.msra.mxu0 %v1580_v13  ;;  %1376 = vmatpush3.bf16.msra.mxu1 %v1584_v14 }
  0xc6   : > { %1357 = vmatprep.subr.bf16.mxu0 %v1800_v0  ;;  %1377 = vmatprep.subr.bf16.mxu1 %v1800_v0 }
  0xc9   : > { %1358 = vmatpush3.bf16.msra.mxu0 %v1582_v15  ;;  %1378 = vmatpush3.bf16.msra.mxu1 %v1586_v19 }
  0xca   : > { %1383 = vmatprep.subr.bf16.mxu0 %v1800_v0 }
  0xcc   : > { %1360 = vmatmul.mubr.bf16.vlgmr.msra.gmra.mrb[0].mxu0 %v442_v18  ;;  %1380 = vmatmul.mubr.bf16.vlgmr.msra.gmra.mrb[0].mxu1 %v442_v18 }
  0xcd   : > { %1384 = vmatpush3.bf16.msra.mxu0 %v1585_v20  ;;  %1399 = vmatprep.mubr.msk.bf16.mxu0 %vm1801_vm0, %v1800_v0 }
  0xce   : > { %1385 = vmatprep.subr.bf16.mxu0 %v1800_v0 }
  0xd1   : > { %1386 = vmatpush3.bf16.msra.mxu0 %v1587_v21 }
  0xd2   : > { %1387 = vmatprep.subr.bf16.mxu0 %v1800_v0 }
  0xd5   : > { %1388 = vmatpush3.bf16.msra.mxu0 %v1588_v22 }
  0xd6   : > { %1389 = vmatprep.subr.bf16.mxu0 %v1800_v0 }
  0xd9   : > { %1390 = vmatpush3.bf16.msra.mxu0 %v1589_v23 }
  0xda   : > { %1391 = vmatprep.subr.bf16.mxu0 %v1800_v0 }
  0xdd   : > { %1392 = vmatpush3.bf16.msra.mxu0 %v1590_v24 }
  0xde   : > { %1393 = vmatprep.subr.bf16.mxu0 %v1800_v0 }
  0xe1   : > { %1394 = vmatpush3.bf16.msra.mxu0 %v1591_v25 }
  0xe2   : > { %1395 = vmatprep.subr.bf16.mxu0 %v1800_v0 }
  0xe5   : > { %1396 = vmatpush3.bf16.msra.mxu0 %v1592_v26 }
  0xe6   : > { %1397 = vmatprep.subr.bf16.mxu0 %v1800_v0 }
  0xe9   : > { %1398 = vmatpush3.bf16.msra.mxu0 %v1593_v27 }
  0xec   : > { %1400 = vmatmul.mubr.bf16.vlgmr.msra.gmra.mrb[4].mxu0 %v442_v18 }
 0x19f   : > { %v548_v29 = vpop.f32.mrb[0].mxu0  ;;  %v698_v37 = vpop.f32.mrb[0].mxu1 }
 0x1a0   : > { %v549_v30 = vadd.f32 %v1245_v28, %v548_v29  ;;  %v1361_v31 = vpop.f32.mrb[1].mxu0  ;;  %v699_v38 = vadd.f32 %v1262_v32, %v698_v37  ;;  %v1381_v39 = vpop.f32.mrb[1].mxu1 }
 0x1a1   : > { %v551_v33 = vpop.f32.mrb[2].mxu0  ;;  %v701_v41 = vpop.f32.mrb[2].mxu1 }
 0x1a2   : > { %v1310_v34 = vpack.c.bf16 %v549_v30, %v549_v30  ;;  %v552_v35 = vadd.f32 %v1245_v28, %v551_v33  ;;  %v1362_v36 = vpop.f32.mrb[3].mxu0  ;;  %v1312_v42 = vpack.c.bf16 %v699_v38, %v699_v38  ;;  %v702_v43 = vadd.f32 %v1262_v32, %v701_v41  ;;  %v1382_v44 = vpop.f32.mrb[3].mxu1 }
 0x1a4   : > { %564 = vst.msk [vmem:[%s2174_s8] sm:$0xf] %vm563_vm1, %v1310_v34  ;;  %v1311_v40 = vpack.c.bf16 %v552_v35, %v552_v35  ;;  %575 = vrot.lane.b32.xlu1 %v1310_v34, %s1802_s1  ;;  %566 = vrot.lane.b32.xlu0 %v1310_v34, %s1803_s29  ;;  %713 = vst.msk [vmem:[%s2183_s18] sm:$0xf] %vm563_vm1, %v1312_v42  ;;  %v1313_v45 = vpack.c.bf16 %v702_v43, %v702_v43 }
 0x1a6   : > { %565 = vst.msk [vmem:[%s2174_s8 + $0x4] sm:$0xf] %vm563_vm1, %v1311_v40  ;;  %714 = vst.msk [vmem:[%s2183_s18 + $0x4] sm:$0xf] %vm563_vm1, %v1313_v45 }
 0x1a8   : > { %584 = vrot.lane.b32.xlu0 %v1310_v34, %s1804_s22  ;;  %577 = vrot.lane.b32.xlu1 %v1311_v40, %s1802_s1 }
 0x1ac   : > { %715 = vrot.lane.b32.xlu0 %v1312_v42, %s1803_s29  ;;  %586 = vrot.lane.b32.xlu1 %v1311_v40, %s1804_s22 }
 0x1b0   : > { %724 = vrot.lane.b32.xlu0 %v1312_v42, %s1802_s1  ;;  %717 = vrot.lane.b32.xlu1 %v1313_v45, %s1803_s29 }
 0x1b4   : > { %733 = vrot.lane.b32.xlu0 %v1312_v42, %s1804_s22  ;;  %726 = vrot.lane.b32.xlu1 %v1313_v45, %s1802_s1 }
 0x1b8   : > { %735 = vrot.lane.b32.xlu1 %v1313_v45, %s1804_s22  ;;  %568 = vrot.lane.b32.xlu0 %v1311_v40, %s1803_s29 }
 0x1bf   : > { %v847_v47 = vpop.f32.mrb[4].mxu0 }
 0x1c0   : > { %v848_v48 = vadd.f32 %v1279_v46, %v847_v47  ;;  %v1401_v49 = vpop.f32.mrb[5].mxu0 }
 0x1c1   : > { %v850_v50 = vpop.f32.mrb[6].mxu0 }
 0x1c2   : > { %v1314_v51 = vpack.c.bf16 %v848_v48, %v848_v48  ;;  %v851_v52 = vadd.f32 %v1279_v46, %v850_v50  ;;  %v1402_v53 = vpop.f32.mrb[7].mxu0 }
 0x1c4   : > { %862 = vst.msk [vmem:[%s2200_s7] sm:$0xf] %vm563_vm1, %v1314_v51  ;;  %v1315_v54 = vpack.c.bf16 %v851_v52, %v851_v52  ;;  %864 = vrot.lane.b32.xlu0 %v1314_v51, %s1803_s29 }
 0x1c6   : > { %863 = vst.msk [vmem:[%s2200_s7 + $0x4] sm:$0xf] %vm563_vm1, %v1315_v54  ;;  %866 = vrot.lane.b32.xlu1 %v1315_v54, %s1803_s29 }
 0x1c8   : > { %873 = vrot.lane.b32.xlu0 %v1314_v51, %s1802_s1 }
 0x1ca   : > { %875 = vrot.lane.b32.xlu1 %v1315_v54, %s1802_s1 }
 0x1cc   : > { %882 = vrot.lane.b32.xlu0 %v1314_v51, %s1804_s22 }
 0x1ce   : > { %884 = vrot.lane.b32.xlu1 %v1315_v54, %s1804_s22 }
 0x216   : > { %v576_v55 = vpop.permute.xlu1 %575  ;;  %v567_v56 = vpop.permute.xlu0 %566 }
 0x217   : > { %1258 = vst.msk [vmem:[%s2174_s8 + $0x10] sm:$0xf] %vm563_vm1, %v576_v55  ;;  %1256 = vst.msk [vmem:[%s2174_s8 + $0x8] sm:$0xf] %vm563_vm1, %v567_v56 }
 0x21a   : > { %v585_v57 = vpop.permute.xlu0 %584  ;;  %v578_v58 = vpop.permute.xlu1 %577 }
 0x21b   : > { %1260 = vst.msk [vmem:[%s2174_s8 + $0x18] sm:$0xf] %vm563_vm1, %v585_v57  ;;  %1259 = vst.msk [vmem:[%s2174_s8 + $0x14] sm:$0xf] %vm563_vm1, %v578_v58 }
 0x21e   : > { %v716_v59 = vpop.permute.xlu0 %715  ;;  %v587_v60 = vpop.permute.xlu1 %586 }
 0x21f   : > { %1273 = vst.msk [vmem:[%s2183_s18 + $0x8] sm:$0xf] %vm563_vm1, %v716_v59  ;;  %1261 = vst.msk [vmem:[%s2174_s8 + $0x1c] sm:$0xf] %vm563_vm1, %v587_v60 }
 0x222   : > { %v725_v61 = vpop.permute.xlu0 %724  ;;  %v718_v62 = vpop.permute.xlu1 %717 }
 0x223   : > { %1275 = vst.msk [vmem:[%s2183_s18 + $0x10] sm:$0xf] %vm563_vm1, %v725_v61  ;;  %1274 = vst.msk [vmem:[%s2183_s18 + $0xc] sm:$0xf] %vm563_vm1, %v718_v62 }
 0x226   : > { %v734_v63 = vpop.permute.xlu0 %733  ;;  %v727_v0 = vpop.permute.xlu1 %726 }
 0x227   : > { %1277 = vst.msk [vmem:[%s2183_s18 + $0x18] sm:$0xf] %vm563_vm1, %v734_v63  ;;  %1276 = vst.msk [vmem:[%s2183_s18 + $0x14] sm:$0xf] %vm563_vm1, %v727_v0 }
 0x22a   : > { %v736_v1 = vpop.permute.xlu1 %735  ;;  %v569_v2 = vpop.permute.xlu0 %568 }
 0x22b   : > { %1278 = vst.msk [vmem:[%s2183_s18 + $0x1c] sm:$0xf] %vm563_vm1, %v736_v1  ;;  %1257 = vst.msk [vmem:[%s2174_s8 + $0xc] sm:$0xf] %vm563_vm1, %v569_v2 }
 0x236   : > { %v865_v3 = vpop.permute.xlu0 %864 }
 0x237   : > { %1290 = vst.msk [vmem:[%s2200_s7 + $0x8] sm:$0xf] %vm563_vm1, %v865_v3 }
 0x238   : > { %v867_v4 = vpop.permute.xlu1 %866 }
 0x239   : > { %1291 = vst.msk [vmem:[%s2200_s7 + $0xc] sm:$0xf] %vm563_vm1, %v867_v4 }
 0x23a   : > { %v874_v5 = vpop.permute.xlu0 %873 }
 0x23b   : > { %1292 = vst.msk [vmem:[%s2200_s7 + $0x10] sm:$0xf] %vm563_vm1, %v874_v5 }
 0x23c   : > { %v876_v6 = vpop.permute.xlu1 %875 }
 0x23d   : > { %1293 = vst.msk [vmem:[%s2200_s7 + $0x14] sm:$0xf] %vm563_vm1, %v876_v6 }
 0x23e   : > { %v883_v7 = vpop.permute.xlu0 %882 }
 0x23f   : > { %1294 = vst.msk [vmem:[%s2200_s7 + $0x18] sm:$0xf] %vm563_vm1, %v883_v7 }
 0x240   : > { %v885_v8 = vpop.permute.xlu1 %884 }
 0x241   : > { %1295 = vst.msk [vmem:[%s2200_s7 + $0x1c] sm:$0xf] %vm563_vm1, %v885_v8 }
 0x242   : > { %s2390_s24 = sld [smem:[#allocation26_spill]]  ;;  %s2391_s3 = sld [smem:[#allocation27_spill]] }
 0x243   : > { %s933_s12 = sshll.u32 %s2174_s8, 4  ;;  %s2392_s29 = sld [smem:[#allocation33_spill]]  ;;  %s934_s12 = int_to_ptr.vmem [resolvable:$true] %s933_s12 }
 0x244   : > { %s1805_s25 = smov 128   ;;  %s1806_s27 = smov 256  }
 0x245   : > { %1417 = sst [smem:[#allocation15]] (%p2049_p3), %s1805_s25  ;;  %s1807_s30 = smov 2  }
 0x246   : > { %1418 = sst [smem:[#allocation15 + $0x1]] (%p2049_p3), %s1806_s27  ;;  %s1809_s8 = smov 4  }
 0x247   : > { %1419 = sst [smem:[#allocation15 + $0x2]] (%p2049_p3), %s1807_s30 }
 0x248   : > { %s1299_s19 = sshll.u32 %s2390_s24, 1  ;;  %s1300_s21 = sshll.u32 %s2391_s3, 4 }
 0x249   : > { %s914_s23 = sadd.s32 %s1300_s21, %s1299_s19  ;;  %s1808_s24 = smov 64  }
 0x24a   : > { %s2254_s1 = sshll.u32 %s914_s23, 6  ;;  %1420 = sst [smem:[#allocation15 + $0x3]] (%p2049_p3), %s1808_s24 }
 0x24b   : > { %s916_s22 = scalar_lea.hbm %s2392_s29, %s2254_s1  ;;  %1421 = sst [smem:[#allocation15 + $0x4]] (%p2049_p3), %s1808_s24 }
 0x24c   : > { %1422 = sst [smem:[#allocation15 + $0x5]] (%p2049_p3), %s1809_s8  ;;  %s1810_s3 = smov [#allocation14]  }
 0x24d   : > { %s1811_s19 = smov 0  }
 0x24e   : > { %1423 = dma.general (%p2049_p3), %s934_s12, 512, %s916_s22, %s892_s28, %s1810_s3, [#allocation15], %s1811_s19, 0  }
 0x24f   : > { %s2393_s17 = sld [smem:[#allocation34_spill]]  ;;  %s980_s29 = sshll.u32 %s2183_s18, 4  ;;  %s981_s29 = int_to_ptr.vmem [resolvable:$true] %s980_s29 }
 0x250   : > { %s1812_s25 = smov 128   ;;  %s1813_s28 = smov 256  }
 0x251   : > { %1424 = sst [smem:[#allocation17]] (%p2049_p3), %s1812_s25  ;;  %s1814_s12 = smov 2  }
 0x252   : > { %1425 = sst [smem:[#allocation17 + $0x1]] (%p2049_p3), %s1813_s28  ;;  %s1815_s22 = smov 64  }
 0x253   : > { %1426 = sst [smem:[#allocation17 + $0x2]] (%p2049_p3), %s1814_s12  ;;  %s1816_s27 = smov 4  }
 0x254   : > { %1427 = sst [smem:[#allocation17 + $0x3]] (%p2049_p3), %s1815_s22  ;;  %s1817_s30 = smov [#allocation16]  }
 0x255   : > { %s963_s20 = scalar_lea.hbm %s2393_s17, %s2254_s1  ;;  %1428 = sst [smem:[#allocation17 + $0x4]] (%p2049_p3), %s1815_s22 }
 0x256   : > { %1429 = sst [smem:[#allocation17 + $0x5]] (%p2049_p3), %s1816_s27  ;;  %s1818_s18 = smov 0  }
 0x257   : > { %1430 = dma.general (%p2049_p3), %s981_s29, 512, %s963_s20, %s2249_s5, %s1817_s30, [#allocation17], %s1818_s18, 0  }
 0x258   : > { %s2394_s3 = sld [smem:[#allocation35_spill]]  ;;  %s1027_s21 = sshll.u32 %s2200_s7, 4  ;;  %s1028_s21 = int_to_ptr.vmem [resolvable:$true] %s1027_s21 }
 0x259   : > { %s1819_s23 = smov 128   ;;  %s1820_s17 = smov 256  }
 0x25a   : > { %1431 = sst [smem:[#allocation19]] (%p2049_p3), %s1819_s23  ;;  %s1821_s20 = smov 2  }
 0x25b   : > { %1432 = sst [smem:[#allocation19 + $0x1]] (%p2049_p3), %s1820_s17  ;;  %s1822_s29 = smov 64  }
 0x25c   : > { %1433 = sst [smem:[#allocation19 + $0x2]] (%p2049_p3), %s1821_s20  ;;  %s1823_s25 = smov 4  }
 0x25d   : > { %1434 = sst [smem:[#allocation19 + $0x3]] (%p2049_p3), %s1822_s29  ;;  %s1825_s7 = smov 0  }
 0x25e   : > { %s1010_s19 = scalar_lea.hbm %s2394_s3, %s2254_s1  ;;  %1435 = sst [smem:[#allocation19 + $0x4]] (%p2049_p3), %s1822_s29 }
 0x25f   : > { %1436 = sst [smem:[#allocation19 + $0x5]] (%p2049_p3), %s1823_s25  ;;  %s1824_s1 = smov [#allocation18]  }
 0x260   : > { %1437 = dma.general (%p2049_p3), %s1028_s21, 512, %s1010_s19, %s2249_s5, %s1824_s1, [#allocation19], %s1825_s7, 0  }
 0x261 PF: > { %s2395_s28 = sld [smem:[#allocation25_spill]]  ;;  %s2396_s12 = sld [smem:[#allocation28_spill]] }
 0x262   : > { %p1472_p5 = scmp.ge.s32.totalorder %s1790_s16, 2 }
 0x267   : > { %s1055_s22 = sand.u32 1, %s2395_s28   ;;  %p2397_p7 = scmp.ne.s32.totalorder %s2396_s12, 0 }
 0x268   : > { %s1056_s27 = scalar_lea.sflag [#allocation4], %s1055_s22 }
 0x269   : > { %p1456_p11 = pnand %p1472_p5, %p2397_p7 }
 0x26b   : > { %1753 = dma.done.wait (!%p1456_p11), %s1056_s27, 512  }
 0x26c   : > { %1755 = vsyncadd (!%p1456_p11), %s1056_s27, 4294966784  ;;  %s2398_s30 = sadd.s32 4294967294, %s1790_s16  }
 0x26d   : > { %s1064_s18 = sand.u32 1, %s2398_s30  }
 0x26e   : > { %s1065_s24 = scalar_lea.sflag [#allocation12], %s1064_s18 }
 0x26f   : > { %1757 = dma.done.wait (!%p1456_p11), %s1065_s24, 1024  }
 0x270   : > { %1759 = vsyncadd (!%p1456_p11), %s1065_s24, 4294966272  ;;  %s31_s16 = sadd.s32 1, %s1790_s16   ;;  %s2399_s5 = sld [smem:[#allocation29_spill]] }
 0x271   : > { %p28_p3 = scmp.ge.s32.totalorder %s31_s16, 6   ;;  %s2400_s30 = smov %s1766_s10 }
 0x272   : > { %s2401_s10 = smov %s1770_s11  ;;  %s2402_s11 = smov %s2066_s26 }
 0x273   : > { %s2403_s12 = smov %s1782_s14  ;;  %s2404_s13 = smov %s1786_s15 }
 0x274   : > { %s2405_s14 = smov %s2408_s9  ;;  %30 = sbr.rel (!%p28_p3) target bundleno = 18 (0x12), region = 161 }
 0x276   : > { %s2406_s15 = smov %s2399_s5 }
 0x27b   :  { %1079 = vsyncpa [#allocation3], 1 }
 0x27c   :  { %1081 = vsyncpa [#allocation3 + $0x1], 1 }
 0x27d   :  { %1082 = vsyncpa [#allocation6], 1 }
 0x27e   :  { %1083 = vsyncpa [#allocation9], 1 }
 0x27f   :  { %1084 = vsyncpa [#allocation4], 1 }
 0x280   :  { %1086 = vsyncpa [#allocation4 + $0x1], 1 }
 0x281   :  { %1087 = vsyncpa [#allocation12], 1 }
 0x282   :  { %1089 = vsyncpa [#allocation12 + $0x1], 1 }

</bundles_post_ra>
